<compile_context>
chip_gen: v6e
topology: v6e:2x2x1
jax: 0.10.0
libtpu: 0.0.40
codegen_flags: <defaults>
</compile_context>

<pallas_src>
import functools

import jax
import jax.numpy as jnp
from jax.experimental import pallas as pl
from jax.experimental.pallas import tpu as pltpu


def _knn_mode_kernel(d_ref, s_ref, m_ref, out_ref, *, k):
    # d_ref: [C, tn]  dest-coord tile (transposed, f32)
    # s_ref: [M, C]   all source coords (f32)
    # m_ref: [D, M]   all source mask values (transposed, bf16 class ids)
    # out  : [D, tn]  voted mask for this dest tile (lane-dense)
    d = d_ref[...]                                   # [C, tn] f32
    s = s_ref[...]                                   # [M, C] f32
    M, C = s.shape
    tn = d.shape[1]

    # Squared distances [M, tn], explicit (s - d)^2 on the VPU (C is tiny).
    dist = jnp.zeros((M, tn), jnp.float32)
    for c in range(C):
        diff = s[:, c:c + 1] - d[c:c + 1, :]         # [M,1] - [1,tn] -> [M,tn]
        dist = dist + diff * diff

    row_ids = jax.lax.broadcasted_iota(jnp.int32, (M, tn), 0)
    inf = jnp.float32(jnp.inf)

    # Iterative K-selection: per-column min over the M (sublane) axis, lowest
    # index on exact ties, then mask that source out and repeat.
    work = dist
    onehots = []
    for _ in range(k):
        min_val = jnp.min(work, axis=0, keepdims=True)              # [1, tn]
        is_min = work == min_val
        first_idx = jnp.min(jnp.where(is_min, row_ids, M),
                            axis=0, keepdims=True)                  # [1, tn]
        onehot = row_ids == first_idx                               # [M, tn]
        onehots.append(onehot.astype(jnp.bfloat16))
        work = jnp.where(onehot, inf, work)

    # Single batched one-hot gather on the MXU: [D, M] @ [M, K*tn] -> [D, K*tn]
    # bf16 inputs are exact for 0/1 one-hots and small integer class ids.
    oh_cat = jnp.concatenate(onehots, axis=1)                       # [M, k*tn]
    g_all = jnp.dot(m_ref[...], oh_cat,
                    preferred_element_type=jnp.float32)             # [D, k*tn]
    gathered = [g_all[:, j * tn:(j + 1) * tn] for j in range(k)]    # K x [D,tn]

    # Mode over the K gathered values, element-wise over [D, tn].
    # counts[j] = #{l : g[l] == g[j]}; pick max count, ties -> smallest value
    # (matches torch.mode tie-breaking).
    counts = []
    for j in range(k):
        c = jnp.zeros_like(gathered[j])
        for l in range(k):
            c = c + (gathered[l] == gathered[j]).astype(jnp.float32)
        counts.append(c)

    best_val = gathered[0]
    best_cnt = counts[0]
    for j in range(1, k):
        better = (counts[j] > best_cnt) | (
            (counts[j] == best_cnt) & (gathered[j] < best_val))
        best_val = jnp.where(better, gathered[j], best_val)
        best_cnt = jnp.where(better, counts[j], best_cnt)

    out_ref[...] = best_val.astype(out_ref.dtype)


def knn_mask_interp(s_coor, s_mask, d_coor, k, tile_n=256):
    """Pallas implementation of knn_mask_interp.forward. Returns [N, D] f32.

    Note: s_mask values (class ids) are carried as bf16 inside the kernel,
    which is exact for integer ids <= 256.
    """
    M, C = s_coor.shape
    M2, D = s_mask.shape
    N, C2 = d_coor.shape
    assert M2 == M and C2 == C
    assert k <= M, "k must not exceed the number of source points"

    # Lane-dense tiles: tile_n must be a multiple of 128.  Shrink the tile for
    # small N so padding never exceeds one 128-wide step.
    tile_n = max(128, 128 * (tile_n // 128))
    tile_n = min(tile_n, 128 * pl.cdiv(N, 128))
    n_pad = tile_n * pl.cdiv(N, tile_n)

    d_t = jnp.transpose(d_coor).astype(jnp.float32)          # [C, N]
    if n_pad != N:
        d_t = jnp.pad(d_t, ((0, 0), (0, n_pad - N)))         # padded cols discarded
    s_c = s_coor.astype(jnp.float32)                          # [M, C]
    m_t = jnp.transpose(s_mask).astype(jnp.bfloat16)          # [D, M] (exact small ints)

    kernel = functools.partial(_knn_mode_kernel, k=k)
    out_t = pl.pallas_call(
        kernel,
        out_shape=jax.ShapeDtypeStruct((D, n_pad), jnp.float32),
        grid_spec=pltpu.PrefetchScalarGridSpec(
            num_scalar_prefetch=0,
            grid=(n_pad // tile_n,),
            in_specs=[
                pl.BlockSpec((C, tile_n), lambda i: (0, i)),  # dest coords tile
                pl.BlockSpec((M, C), lambda i: (0, 0)),       # all source coords
                pl.BlockSpec((D, M), lambda i: (0, 0)),       # all source mask (bf16)
            ],
            out_specs=pl.BlockSpec((D, tile_n), lambda i: (0, i)),  # lane-dense
        ),
        compiler_params=pltpu.CompilerParams(
            dimension_semantics=("parallel",),
            # Explicit budget: under v7x's 64 MiB physical VMEM, above the
            # 16/32 MiB scoped defaults on v5e/v6e.
            vmem_limit_bytes=48 * 1024 * 1024,
        ),
    )(d_t, s_c, m_t)

    return jnp.transpose(out_t[:, :N])                        # [N, D]


def _reference(s_coor, s_mask, d_coor, k):
    """Pure-JAX reference reproducing the PyTorch semantics."""
    dist = jnp.sum((d_coor[:, None, :] - s_coor[None, :, :]) ** 2, axis=-1)
    _, idx = jax.lax.top_k(-dist, k)                # [N, K]
    g = s_mask[idx]                                 # [N, K, D]
    counts = jnp.sum(
        (g[:, :, None, :] == g[:, None, :, :]).astype(jnp.float32), axis=2)
    best_val = g[:, 0, :]
    best_cnt = counts[:, 0, :]
    for j in range(1, k):
        better = (counts[:, j, :] > best_cnt) | (
            (counts[:, j, :] == best_cnt) & (g[:, j, :] < best_val))
        best_val = jnp.where(better, g[:, j, :], best_val)
        best_cnt = jnp.where(better, counts[:, j, :], best_cnt)
    return best_val


if __name__ == "__main__":
    K = 3
    M, N, C, D = 64, 512, 3, 4   # N/tile_n = 2 grid steps (shards across v7x's 2 TCs)

    key = jax.random.PRNGKey(0)
    k1, k2, k3 = jax.random.split(key, 3)
    s_coor = jax.random.normal(k1, (M, C), dtype=jnp.float32)
    d_coor = jax.random.normal(k2, (N, C), dtype=jnp.float32)
    # mask = small integer class ids, stored as float32
    s_mask = jax.random.randint(k3, (M, D), 0, 3).astype(jnp.float32)

    out = knn_mask_interp(s_coor, s_mask, d_coor, K)
    out = jax.block_until_ready(out)

    ref = _reference(s_coor, s_mask, d_coor, K)
    assert out.shape == (N, D)
    assert jnp.allclose(out, ref), "mismatch vs pure-JAX reference"

    print("KERNEL_OK")
</pallas_src>

<mosaic_0001>
module attributes {stable_mosaic.version = 11 : i64} {
  func.func @_knn_mode_kernel(%arg0: i32, %arg1: memref<3x256xf32, #tpu.memory_space<vmem>>, %arg2: memref<64x3xf32, #tpu.memory_space<vmem>>, %arg3: memref<4x64xbf16, #tpu.memory_space<vmem>>, %arg4: memref<4x256xf32, #tpu.memory_space<vmem>>) attributes {dimension_semantics = [#tpu.dimension_semantics<parallel>], iteration_bounds = array<i64: 2>, scalar_prefetch = 0 : i64, scratch_operands = 0 : i64, tpu.core_type = #tpu.core_type<tc>, window_params = [{transform_indices = @transform_0, window_bounds = array<i64: 3, 256>}, {pipeline_mode = #tpu.pipeline_mode<synchronous>, transform_indices = @transform_1, window_bounds = array<i64: 64, 3>}, {pipeline_mode = #tpu.pipeline_mode<synchronous>, transform_indices = @transform_2, window_bounds = array<i64: 4, 64>}, {transform_indices = @transform_3, window_bounds = array<i64: 4, 256>}]} {
    %c0 = arith.constant 0 : index
    %c0_0 = arith.constant 0 : index
    %0 = vector.load %arg1[%c0, %c0_0] : memref<3x256xf32, #tpu.memory_space<vmem>>, vector<3x256xf32>
    %c0_1 = arith.constant 0 : index
    %c0_2 = arith.constant 0 : index
    %1 = vector.load %arg2[%c0_1, %c0_2] : memref<64x3xf32, #tpu.memory_space<vmem>>, vector<64x3xf32>
    %cst = arith.constant 0.000000e+00 : f32
    %2 = vector.broadcast %cst : f32 to vector<64x256xf32>
    %3 = vector.extract_strided_slice %1 {offsets = [0, 0], sizes = [64, 1], strides = [1, 1]} : vector<64x3xf32> to vector<64x1xf32>
    %4 = vector.extract_strided_slice %0 {offsets = [0, 0], sizes = [1, 256], strides = [1, 1]} : vector<3x256xf32> to vector<1x256xf32>
    %5 = vector.broadcast %3 : vector<64x1xf32> to vector<64x256xf32>
    %6 = vector.broadcast %4 : vector<1x256xf32> to vector<64x256xf32>
    %7 = arith.subf %5, %6 : vector<64x256xf32>
    %8 = arith.mulf %7, %7 : vector<64x256xf32>
    %9 = arith.addf %2, %8 : vector<64x256xf32>
    %10 = vector.extract_strided_slice %1 {offsets = [0, 1], sizes = [64, 1], strides = [1, 1]} : vector<64x3xf32> to vector<64x1xf32>
    %11 = vector.extract_strided_slice %0 {offsets = [1, 0], sizes = [1, 256], strides = [1, 1]} : vector<3x256xf32> to vector<1x256xf32>
    %12 = vector.broadcast %10 : vector<64x1xf32> to vector<64x256xf32>
    %13 = vector.broadcast %11 : vector<1x256xf32> to vector<64x256xf32>
    %14 = arith.subf %12, %13 : vector<64x256xf32>
    %15 = arith.mulf %14, %14 : vector<64x256xf32>
    %16 = arith.addf %9, %15 : vector<64x256xf32>
    %17 = vector.extract_strided_slice %1 {offsets = [0, 2], sizes = [64, 1], strides = [1, 1]} : vector<64x3xf32> to vector<64x1xf32>
    %18 = vector.extract_strided_slice %0 {offsets = [2, 0], sizes = [1, 256], strides = [1, 1]} : vector<3x256xf32> to vector<1x256xf32>
    %19 = vector.broadcast %17 : vector<64x1xf32> to vector<64x256xf32>
    %20 = vector.broadcast %18 : vector<1x256xf32> to vector<64x256xf32>
    %21 = arith.subf %19, %20 : vector<64x256xf32>
    %22 = arith.mulf %21, %21 : vector<64x256xf32>
    %23 = arith.addf %16, %22 : vector<64x256xf32>
    %24 = tpu.iota {dimensions = array<i32: 0>} : vector<64x256xi32>
    %cst_3 = arith.constant dense<0x7F800000> : vector<256xf32>
    %25 = vector.multi_reduction <minimumf>, %23, %cst_3 [0] : vector<64x256xf32> to vector<256xf32>
    %26 = vector.shape_cast %25 : vector<256xf32> to vector<1x256xf32>
    %27 = vector.broadcast %26 : vector<1x256xf32> to vector<64x256xf32>
    %28 = arith.cmpf oeq, %23, %27 : vector<64x256xf32>
    %c64_i32 = arith.constant 64 : i32
    %29 = vector.broadcast %c64_i32 : i32 to vector<64x256xi32>
    %30 = arith.select %28, %24, %29 : vector<64x256xi1>, vector<64x256xi32>
    %cst_4 = arith.constant dense<2147483647> : vector<256xi32>
    %31 = vector.multi_reduction <minsi>, %30, %cst_4 [0] : vector<64x256xi32> to vector<256xi32>
    %32 = vector.shape_cast %31 : vector<256xi32> to vector<1x256xi32>
    %33 = vector.broadcast %32 : vector<1x256xi32> to vector<64x256xi32>
    %34 = arith.cmpi eq, %24, %33 : vector<64x256xi32>
    %35 = arith.extui %34 : vector<64x256xi1> to vector<64x256xi32>
    %36 = arith.sitofp %35 : vector<64x256xi32> to vector<64x256xf32>
    %37 = arith.truncf %36 : vector<64x256xf32> to vector<64x256xbf16>
    %cst_5 = arith.constant 0x7F800000 : f32
    %38 = vector.broadcast %cst_5 : f32 to vector<64x256xf32>
    %39 = arith.select %34, %38, %23 : vector<64x256xi1>, vector<64x256xf32>
    %cst_6 = arith.constant dense<0x7F800000> : vector<256xf32>
    %40 = vector.multi_reduction <minimumf>, %39, %cst_6 [0] : vector<64x256xf32> to vector<256xf32>
    %41 = vector.shape_cast %40 : vector<256xf32> to vector<1x256xf32>
    %42 = vector.broadcast %41 : vector<1x256xf32> to vector<64x256xf32>
    %43 = arith.cmpf oeq, %39, %42 : vector<64x256xf32>
    %c64_i32_7 = arith.constant 64 : i32
    %44 = vector.broadcast %c64_i32_7 : i32 to vector<64x256xi32>
    %45 = arith.select %43, %24, %44 : vector<64x256xi1>, vector<64x256xi32>
    %cst_8 = arith.constant dense<2147483647> : vector<256xi32>
    %46 = vector.multi_reduction <minsi>, %45, %cst_8 [0] : vector<64x256xi32> to vector<256xi32>
    %47 = vector.shape_cast %46 : vector<256xi32> to vector<1x256xi32>
    %48 = vector.broadcast %47 : vector<1x256xi32> to vector<64x256xi32>
    %49 = arith.cmpi eq, %24, %48 : vector<64x256xi32>
    %50 = arith.extui %49 : vector<64x256xi1> to vector<64x256xi32>
    %51 = arith.sitofp %50 : vector<64x256xi32> to vector<64x256xf32>
    %52 = arith.truncf %51 : vector<64x256xf32> to vector<64x256xbf16>
    %cst_9 = arith.constant 0x7F800000 : f32
    %53 = vector.broadcast %cst_9 : f32 to vector<64x256xf32>
    %54 = arith.select %49, %53, %39 : vector<64x256xi1>, vector<64x256xf32>
    %cst_10 = arith.constant dense<0x7F800000> : vector<256xf32>
    %55 = vector.multi_reduction <minimumf>, %54, %cst_10 [0] : vector<64x256xf32> to vector<256xf32>
    %56 = vector.shape_cast %55 : vector<256xf32> to vector<1x256xf32>
    %57 = vector.broadcast %56 : vector<1x256xf32> to vector<64x256xf32>
    %58 = arith.cmpf oeq, %54, %57 : vector<64x256xf32>
    %c64_i32_11 = arith.constant 64 : i32
    %59 = vector.broadcast %c64_i32_11 : i32 to vector<64x256xi32>
    %60 = arith.select %58, %24, %59 : vector<64x256xi1>, vector<64x256xi32>
    %cst_12 = arith.constant dense<2147483647> : vector<256xi32>
    %61 = vector.multi_reduction <minsi>, %60, %cst_12 [0] : vector<64x256xi32> to vector<256xi32>
    %62 = vector.shape_cast %61 : vector<256xi32> to vector<1x256xi32>
    %63 = vector.broadcast %62 : vector<1x256xi32> to vector<64x256xi32>
    %64 = arith.cmpi eq, %24, %63 : vector<64x256xi32>
    %65 = arith.extui %64 : vector<64x256xi1> to vector<64x256xi32>
    %66 = arith.sitofp %65 : vector<64x256xi32> to vector<64x256xf32>
    %67 = arith.truncf %66 : vector<64x256xf32> to vector<64x256xbf16>
    %68 = tpu.concatenate %37, %52, %67 in 1 : vector<64x256xbf16>, vector<64x256xbf16>, vector<64x256xbf16> -> vector<64x768xbf16>
    %c0_13 = arith.constant 0 : index
    %c0_14 = arith.constant 0 : index
    %69 = vector.load %arg3[%c0_13, %c0_14] : memref<4x64xbf16, #tpu.memory_space<vmem>>, vector<4x64xbf16>
    %cst_15 = arith.constant dense<0.000000e+00> : vector<4x768xf32>
    %70 = tpu.matmul %69, %68, %cst_15 {dimension_numbers = #tpu.dot_dimension_numbers<[1], [0], [0], [1], [0, 0, 1, 1], [], []>} : vector<4x64xbf16>, vector<64x768xbf16>, vector<4x768xf32> -> vector<4x768xf32>
    %71 = vector.extract_strided_slice %70 {offsets = [0, 0], sizes = [4, 256], strides = [1, 1]} : vector<4x768xf32> to vector<4x256xf32>
    %72 = vector.extract_strided_slice %70 {offsets = [0, 256], sizes = [4, 256], strides = [1, 1]} : vector<4x768xf32> to vector<4x256xf32>
    %73 = vector.extract_strided_slice %70 {offsets = [0, 512], sizes = [4, 256], strides = [1, 1]} : vector<4x768xf32> to vector<4x256xf32>
    %cst_16 = arith.constant 0.000000e+00 : f32
    %74 = vector.broadcast %cst_16 : f32 to vector<4x256xf32>
    %75 = arith.cmpf oeq, %71, %71 : vector<4x256xf32>
    %76 = arith.extui %75 : vector<4x256xi1> to vector<4x256xi32>
    %77 = arith.sitofp %76 : vector<4x256xi32> to vector<4x256xf32>
    %78 = arith.addf %74, %77 : vector<4x256xf32>
    %79 = arith.cmpf oeq, %72, %71 : vector<4x256xf32>
    %80 = arith.extui %79 : vector<4x256xi1> to vector<4x256xi32>
    %81 = arith.sitofp %80 : vector<4x256xi32> to vector<4x256xf32>
    %82 = arith.addf %78, %81 : vector<4x256xf32>
    %83 = arith.cmpf oeq, %73, %71 : vector<4x256xf32>
    %84 = arith.extui %83 : vector<4x256xi1> to vector<4x256xi32>
    %85 = arith.sitofp %84 : vector<4x256xi32> to vector<4x256xf32>
    %86 = arith.addf %82, %85 : vector<4x256xf32>
    %cst_17 = arith.constant 0.000000e+00 : f32
    %87 = vector.broadcast %cst_17 : f32 to vector<4x256xf32>
    %88 = arith.cmpf oeq, %71, %72 : vector<4x256xf32>
    %89 = arith.extui %88 : vector<4x256xi1> to vector<4x256xi32>
    %90 = arith.sitofp %89 : vector<4x256xi32> to vector<4x256xf32>
    %91 = arith.addf %87, %90 : vector<4x256xf32>
    %92 = arith.cmpf oeq, %72, %72 : vector<4x256xf32>
    %93 = arith.extui %92 : vector<4x256xi1> to vector<4x256xi32>
    %94 = arith.sitofp %93 : vector<4x256xi32> to vector<4x256xf32>
    %95 = arith.addf %91, %94 : vector<4x256xf32>
    %96 = arith.cmpf oeq, %73, %72 : vector<4x256xf32>
    %97 = arith.extui %96 : vector<4x256xi1> to vector<4x256xi32>
    %98 = arith.sitofp %97 : vector<4x256xi32> to vector<4x256xf32>
    %99 = arith.addf %95, %98 : vector<4x256xf32>
    %cst_18 = arith.constant 0.000000e+00 : f32
    %100 = vector.broadcast %cst_18 : f32 to vector<4x256xf32>
    %101 = arith.cmpf oeq, %71, %73 : vector<4x256xf32>
    %102 = arith.extui %101 : vector<4x256xi1> to vector<4x256xi32>
    %103 = arith.sitofp %102 : vector<4x256xi32> to vector<4x256xf32>
    %104 = arith.addf %100, %103 : vector<4x256xf32>
    %105 = arith.cmpf oeq, %72, %73 : vector<4x256xf32>
    %106 = arith.extui %105 : vector<4x256xi1> to vector<4x256xi32>
    %107 = arith.sitofp %106 : vector<4x256xi32> to vector<4x256xf32>
    %108 = arith.addf %104, %107 : vector<4x256xf32>
    %109 = arith.cmpf oeq, %73, %73 : vector<4x256xf32>
    %110 = arith.extui %109 : vector<4x256xi1> to vector<4x256xi32>
    %111 = arith.sitofp %110 : vector<4x256xi32> to vector<4x256xf32>
    %112 = arith.addf %108, %111 : vector<4x256xf32>
    %113 = arith.cmpf ogt, %99, %86 : vector<4x256xf32>
    %114 = arith.cmpf oeq, %99, %86 : vector<4x256xf32>
    %115 = arith.cmpf olt, %72, %71 : vector<4x256xf32>
    %116 = arith.andi %114, %115 : vector<4x256xi1>
    %117 = arith.ori %113, %116 : vector<4x256xi1>
    %118 = arith.select %117, %72, %71 : vector<4x256xi1>, vector<4x256xf32>
    %119 = arith.select %117, %99, %86 : vector<4x256xi1>, vector<4x256xf32>
    %120 = arith.cmpf ogt, %112, %119 : vector<4x256xf32>
    %121 = arith.cmpf oeq, %112, %119 : vector<4x256xf32>
    %122 = arith.cmpf olt, %73, %118 : vector<4x256xf32>
    %123 = arith.andi %121, %122 : vector<4x256xi1>
    %124 = arith.ori %120, %123 : vector<4x256xi1>
    %125 = arith.select %124, %73, %118 : vector<4x256xi1>, vector<4x256xf32>
    %c0_19 = arith.constant 0 : index
    %c0_20 = arith.constant 0 : index
    %126 = vector.load %arg4[%c0_19, %c0_20] : memref<4x256xf32, #tpu.memory_space<vmem>>, vector<4x256xf32>
    tpu.vector_store %arg4[%c0_19, %c0_20], %125 {strides = array<i32>} : memref<4x256xf32, #tpu.memory_space<vmem>>, vector<4x256xf32>,
    return
  }
  func.func @transform_0(%arg0: i32) -> (i32, i32) {
    %c0_i32 = arith.constant 0 : i32
    %c0_i32_0 = arith.constant 0 : i32
    return %c0_i32, %arg0 : i32, i32
  }
  func.func @transform_1(%arg0: i32) -> (i32, i32) {
    %c0_i32 = arith.constant 0 : i32
    %c0_i32_0 = arith.constant 0 : i32
    %c0_i32_1 = arith.constant 0 : i32
    return %c0_i32, %c0_i32_0 : i32, i32
  }
  func.func @transform_2(%arg0: i32) -> (i32, i32) {
    %c0_i32 = arith.constant 0 : i32
    %c0_i32_0 = arith.constant 0 : i32
    %c0_i32_1 = arith.constant 0 : i32
    return %c0_i32, %c0_i32_0 : i32, i32
  }
  func.func @transform_3(%arg0: i32) -> (i32, i32) {
    %c0_i32 = arith.constant 0 : i32
    %c0_i32_0 = arith.constant 0 : i32
    return %c0_i32, %arg0 : i32, i32
  }
}

</mosaic_0001>

<bundles_post_ra>
// kernel: tpu_custom_call.1
= control target key start
LH: loop header
LB: loop body
LE: loop exit
PB: predicated region body
PF: predicated region fallthrough
CT: control target
= control target key end

     0   :  { %8 = vsyncpa [#allocation3], 0  ;;  %s2393_s0 = inlined_call_operand.vmem [shape: f32[3,512], index: 0, kind: input, shape index: {}]   ;;  %s2394_s1 = inlined_call_operand.vmem [shape: f32[64,3], index: 1, kind: input, shape index: {}]   ;;  %s2395_s2 = inlined_call_operand.vmem [shape: bf16[4,64], index: 2, kind: input, shape index: {}]   ;;  %s2396_s3 = inlined_call_operand.hbm [shape: f32[4,512], index: 3, kind: output, shape index: {}]  }
   0x1   :  { %10 = vsyncpa [#allocation3 + $0x1], 0  ;;  %s1584_s12 = smov 0   ;;  %s1586_s13 = smov 0  }
   0x2   :  { %s1588_s14 = smov 0   ;;  %s1590_s15 = smov 0  }
   0x3 LB: > { %s1605_s16 = sadd.s32 4294967295, %s1556_s15   ;;  %s1311_s17 = sadd.s32 4294967294, %s1556_s15   ;;  %s1556_s15 = sphi %s1590_s15, %s2406_s15   ;;  %s1552_s14 = sphi %s1588_s14, %s2405_s14   ;;  %s1548_s13 = sphi %s1586_s13, %s2404_s13   ;;  %s1544_s12 = sphi %s1584_s12, %s2403_s12  }
   0x4   : > { %s1609_s18 = sadd.s32 1, %s1556_s15   ;;  %s91_s19 = sadd.s32 1, %s1552_s14 }
   0x5   : > { %s88_s20 = ssub.s32 %s1556_s15, %s1609_s18  ;;  %p101_p0 = scmp.ne.s32.totalorder %s1552_s14, %s1548_s13 }
   0x6   : > { %p89_p1 = scmp.eq.s32.totalorder %s88_s20, 0  ;;  %p102_p2 = scmp.eq.s32.totalorder %s1605_s16, 1 }
   0x7   : > { %p107_p3 = scmp.ne.s32.totalorder %s1548_s13, %s1544_s12  ;;  %p108_p4 = scmp.eq.s32.totalorder %s1311_s17, 1 }
   0x8   : > { %s1620_s21 = scalar_select %p89_p1, %s1552_s14, %s91_s19  }
   0x9   : > { %p1622_p5 = por %p102_p2, %p101_p0  ;;  %p1626_p6 = por %p108_p4, %p107_p3 }
   0xa   : > { %p1314_p7 = scmp.ge.s32.totalorder %s1556_s15, 1  ;;  %p141_p8 = scmp.lt.s32.totalorder %s1556_s15, 3 }
   0xc   : > { %p142_p9 = pnand %p1314_p7, %p141_p8 }
   0xd   : > { %s1316_s19 = sshll.u32 (!%p142_p9), %s1605_s16, 1  ;;  %s162_s29 = sand.u32 (!%p142_p9), 1, %s1548_s13  }
   0xe   : > { %145 = sbr.rel (%p142_p9) target bundleno = 608 (0x260), region = 32  ;;  %p166_p10 = scmp.lt.s32.totalorder (!%p142_p9), %s1316_s19, 3 }
   0xf   : > { %s1315_s30 = sshll.u32 (!%p142_p9), %s162_s29, 3  ;;  %s1440_s4 = sshll.u32 (!%p142_p9), %s1605_s16, 7 }
  0x10   : > { %s164_s5 = scalar_lea.vmem (!%p142_p9), [#allocation2], %s1315_s30  ;;  %s1250_s9 = scalar_lea.hbm (!%p142_p9), %s2396_s3, %s1440_s4 }
  0x11   : > { %s1252_s6 = sshll.u32 (!%p142_p9), %s164_s5, 4  ;;  %s1238_s10 = scalar_lea.sflag (!%p142_p9), [#allocation3], %s162_s29  ;;  %s1253_s6 = int_to_ptr.vmem [resolvable:$true] %s1252_s6 }
  0x12   : > { %s1496_s11 = scalar_lea.vmem (!%p142_p9), %s1253_s6, 128  ;;  %s1563_s16 = smov (!%p142_p9), [#allocation2]  }
  0x13   : > { %v176_v0 = vld [vmem:[%s2394_s1 + $0x10] sm:$0xff]  ;;  %v174_v1 = vld [vmem:[%s2394_s1] sm:$0xff]  ;;  %v1558_v2 = vmov 1   ;;  %v1559_v3 = vmov 0   ;;  %v177_v4 = vld [vmem:[%s2394_s1 + $0x18] sm:$0xff]  ;;  %v1560_v9 = vmov 2   ;;  %v223_v17 = vlaneseq  ;;  %p1497_p11 = scmp.ne.s32.totalorder %s1253_s6, %s1496_s11 }
  0x14   : > { %1486 = vset.pattern.permute.xlu0 %v1558_v2  ;;  %1485 = vset.pattern.permute.xlu1 %v1559_v3  ;;  %v175_v5 = vld [vmem:[%s2394_s1 + $0x8] sm:$0xff]  ;;  %v178_v7 = vld [vmem:[%s2394_s1 + $0x20] sm:$0xff]  ;;  %v181_v8 = vld [vmem:[%s2394_s1 + $0x38] sm:$0xff]  ;;  %s2408_s19 = smov (!%p166_p10, %s1316_s19), 3  ;;  %s1500_s17 = sshll.u32 %s1563_s16, 4  ;;  %s1501_s17 = int_to_ptr.vmem [resolvable:$false] %s1500_s17 }
  0x15   : > { %194 = vperm.xlu1 %1485, %v176_v0   ;;  %290 = vperm.xlu0 %1486, %v174_v1   ;;  %v179_v6 = vld [vmem:[%s2394_s1 + $0x28] sm:$0xff]  ;;  %v180_v10 = vld [vmem:[%s2394_s1 + $0x30] sm:$0xff]  ;;  %s1317_s20 = sshll.u32 %s2408_s19, 2  ;;  %v1663_v20 = vshrl.u32 %v223_v17, 7  ;;  %p1498_p12 = pnand %p1497_p11, %p1622_p5 }
  0x16   : > { %1043 = vmatprep.mubr.bf16.mxu0 %v1559_v3  ;;  %1084 = vmatprep.mubr.bf16.mxu1 %v1559_v3  ;;  %s169_s26 = scalar_lea.vmem %s2393_s0, %s1317_s20  ;;  %s1502_s19 = scalar_lea.vmem %s1501_s17, 256 }
  0x17   : > { %v323_v21 = vsub.s32 1, %v1663_v20  ;;  %v327_v22 = vsub.s32 5, %v1663_v20  ;;  %v225_v24 = vsub.s32 0, %v1663_v20  ;;  %v229_v25 = vsub.s32 4, %v1663_v20  ;;  %v173_v26 = vld [vmem:[%s169_s26] sm:$0x77]  ;;  %p1499_p13 = pneg %p1498_p12  ;;  %p1503_p0 = scmp.lt.s32.totalorder %s1253_s6, %s1501_s17 }
  0x18   : > { %v421_v36 = vsub.s32 2, %v1663_v20  ;;  %v425_v37 = vsub.s32 6, %v1663_v20  ;;  %p1504_p1 = scmp.lt.s32.totalorder %s1502_s19, %s1496_s11 }
  0x19   : > { %199 = vperm.xlu1 %1485, %v177_v4   ;;  %302 = vperm.xlu0 %1486, %v177_v4   ;;  %v324_v28 = vrot.slane %v173_v26, %v323_v21  ;;  %v328_v29 = vrot.slane %v173_v26, %v327_v22  ;;  %v226_v31 = vrot.slane %v173_v26, %v225_v24 }
  0x1a   : > { %v230_v32 = vrot.slane %v173_v26, %v229_v25  ;;  %v422_v49 = vrot.slane %v173_v26, %v421_v36  ;;  %v426_v50 = vrot.slane %v173_v26, %v425_v37  ;;  %p1505_p2 = por %p1504_p1, %p1503_p0 }
  0x1b   : > { %v1676_v33 = vrot.slane %v324_v28, %v323_v21  ;;  %v1678_v34 = vrot.slane %v328_v29, %v323_v21  ;;  %v1686_v39 = vrot.slane %v226_v31, %v225_v24 }
  0x1c   : > { %v1688_v40 = vrot.slane %v230_v32, %v225_v24  ;;  %p1506_p3 = pnand %p1505_p2, %p1499_p13 }
  0x1d   : > { %1487 = vset.pattern.permute.xlu1 %v1558_v2  ;;  %1488 = vset.pattern.permute.xlu0 %v1559_v3 }
  0x1e   : > { %294 = vperm.xlu1 %1487, %v175_v5   ;;  %184 = vperm.xlu0 %1488, %v174_v1  }
  0x22   : > { %298 = vperm.xlu1 %1487, %v176_v0   ;;  %189 = vperm.xlu0 %1488, %v175_v5  }
  0x26   : > { %1489 = vset.pattern.permute.xlu1 %v1559_v3  ;;  %209 = vperm.xlu0 %1488, %v179_v6  }
  0x27   : > { %204 = vperm.xlu1 %1489, %v178_v7  }
  0x2a   : > { %219 = vperm.xlu0 %1488, %v181_v8  }
  0x2b   : > { %1490 = vset.pattern.permute.xlu1 %v1558_v2 }
  0x2c   : > { %306 = vperm.xlu1 %1490, %v178_v7  }
  0x2e   : > { %1493 = vset.pattern.permute.xlu0 %v1560_v9 }
  0x2f   : > { %388 = vperm.xlu0 %1493, %v174_v1  }
  0x30   : > { %310 = vperm.xlu1 %1490, %v179_v6  }
  0x33   : > { %400 = vperm.xlu0 %1493, %v177_v4  }
  0x34   : > { %1491 = vset.pattern.permute.xlu1 %v1560_v9 }
  0x35   : > { %392 = vperm.xlu1 %1491, %v175_v5  }
  0x37   : > { %404 = vperm.xlu0 %1493, %v178_v7  }
  0x39   : > { %396 = vperm.xlu1 %1491, %v176_v0  }
  0x3b   : > { %416 = vperm.xlu0 %1493, %v181_v8  }
  0x3d   : > { %1492 = vset.pattern.permute.xlu1 %v1559_v3 }
  0x3e   : > { %214 = vperm.xlu1 %1492, %v180_v10  }
  0x42   : > { %1494 = vset.pattern.permute.xlu1 %v1558_v2 }
  0x43   : > { %314 = vperm.xlu1 %1494, %v180_v10  }
  0x47   : > { %318 = vperm.xlu1 %1494, %v181_v8   ;;  %v1706_v8 = vrot.slane %v422_v49, %v421_v36 }
  0x4b   : > { %1495 = vset.pattern.permute.xlu1 %v1560_v9  ;;  %v1708_v9 = vrot.slane %v426_v50, %v421_v36 }
  0x4c   : > { %408 = vperm.xlu1 %1495, %v179_v6  }
  0x50   : > { %412 = vperm.xlu1 %1495, %v180_v10  }
  0x90   : > { %v195_v11 = vpop.permute.xlu1 %194  ;;  %v291_v12 = vpop.permute.xlu0 %290 }
  0x91   : > { %v339_v41 = vsub.f32 %v291_v12, %v1676_v33  ;;  %v340_v42 = vsub.f32 %v291_v12, %v1678_v34  ;;  %v245_v51 = vsub.f32 %v195_v11, %v1686_v39  ;;  %v246_v52 = vsub.f32 %v195_v11, %v1688_v40 }
  0x93   : > { %v355_v56 = vmul.f32 %v339_v41, %v339_v41  ;;  %v356_v57 = vmul.f32 %v340_v42, %v340_v42  ;;  %v261_v11 = vmul.f32 %v245_v51, %v245_v51  ;;  %v262_v12 = vmul.f32 %v246_v52, %v246_v52 }
  0x94   : > { %v200_v13 = vpop.permute.xlu1 %199  ;;  %v303_v14 = vpop.permute.xlu0 %302 }
  0x95   : > { %v247_v43 = vsub.f32 %v200_v13, %v1686_v39  ;;  %v248_v44 = vsub.f32 %v200_v13, %v1688_v40  ;;  %v345_v45 = vsub.f32 %v303_v14, %v1676_v33  ;;  %v346_v46 = vsub.f32 %v303_v14, %v1678_v34 }
  0x97   : > { %v263_v61 = vmul.f32 %v247_v43, %v247_v43  ;;  %v264_v62 = vmul.f32 %v248_v44, %v248_v44  ;;  %v361_v63 = vmul.f32 %v345_v45, %v345_v45  ;;  %v362_v0 = vmul.f32 %v346_v46, %v346_v46 }
  0x99   : > { %v295_v15 = vpop.permute.xlu1 %294  ;;  %v185_v16 = vpop.permute.xlu0 %184  ;;  %v378_v17 = vadd.f32 %v362_v0, %v264_v62 }
  0x9a   : > { %v241_v47 = vsub.f32 %v185_v16, %v1686_v39  ;;  %v242_v48 = vsub.f32 %v185_v16, %v1688_v40  ;;  %v341_v1 = vsub.f32 %v295_v15, %v1676_v33  ;;  %v342_v2 = vsub.f32 %v295_v15, %v1678_v34 }
  0x9b   : > { %v377_v16 = vadd.f32 %v361_v63, %v263_v61 }
  0x9c   : > { %v257_v4 = vmul.f32 %v241_v47, %v241_v47  ;;  %v258_v5 = vmul.f32 %v242_v48, %v242_v48  ;;  %v357_v15 = vmul.f32 %v341_v1, %v341_v1  ;;  %v358_v21 = vmul.f32 %v342_v2, %v342_v2 }
  0x9d   : > { %v299_v18 = vpop.permute.xlu1 %298  ;;  %v190_v19 = vpop.permute.xlu0 %189 }
  0x9e   : > { %v343_v53 = vsub.f32 %v299_v18, %v1676_v33  ;;  %v344_v54 = vsub.f32 %v299_v18, %v1678_v34  ;;  %v243_v58 = vsub.f32 %v190_v19, %v1686_v39  ;;  %v244_v59 = vsub.f32 %v190_v19, %v1688_v40 }
  0x9f   : > { %v371_v22 = vadd.f32 %v355_v56, %v257_v4  ;;  %v372_v24 = vadd.f32 %v356_v57, %v258_v5 }
  0xa0   : > { %v359_v6 = vmul.f32 %v343_v53, %v343_v53  ;;  %v360_v7 = vmul.f32 %v344_v54, %v344_v54  ;;  %v259_v13 = vmul.f32 %v243_v58, %v243_v58  ;;  %v260_v14 = vmul.f32 %v244_v59, %v244_v59 }
  0xa1   : > { %v210_v27 = vpop.permute.xlu0 %209 }
  0xa2   : > { %v1670_v23 = vpop.permute.xlu1 %204  ;;  %v251_v18 = vsub.f32 %v210_v27, %v1686_v39  ;;  %v252_v19 = vsub.f32 %v210_v27, %v1688_v40  ;;  %v375_v26 = vadd.f32 %v359_v6, %v261_v11  ;;  %v376_v28 = vadd.f32 %v360_v7, %v262_v12 }
  0xa3   : > { %v249_v29 = vsub.f32 %v1670_v23, %v1686_v39  ;;  %v250_v31 = vsub.f32 %v1670_v23, %v1688_v40  ;;  %v373_v32 = vadd.f32 %v357_v15, %v259_v13  ;;  %v374_v36 = vadd.f32 %v358_v21, %v260_v14 }
  0xa4   : > { %v267_v42 = vmul.f32 %v251_v18, %v251_v18  ;;  %v268_v43 = vmul.f32 %v252_v19, %v252_v19 }
  0xa5   : > { %v1680_v35 = vpop.permute.xlu0 %219  ;;  %v265_v49 = vmul.f32 %v249_v29, %v249_v29  ;;  %v266_v50 = vmul.f32 %v250_v31, %v250_v31 }
  0xa6   : > { %v255_v46 = vsub.f32 %v1680_v35, %v1686_v39  ;;  %v256_v23 = vsub.f32 %v1680_v35, %v1688_v40 }
  0xa7   : > { %v1674_v30 = vpop.permute.xlu1 %306 }
  0xa8   : > { %v347_v37 = vsub.f32 %v1674_v30, %v1676_v33  ;;  %v348_v27 = vsub.f32 %v1674_v30, %v1678_v34  ;;  %v271_v61 = vmul.f32 %v255_v46, %v255_v46  ;;  %v272_v62 = vmul.f32 %v256_v23, %v256_v23 }
  0xaa   : > { %v389_v60 = vpop.permute.xlu0 %388  ;;  %v363_v52 = vmul.f32 %v347_v37, %v347_v37  ;;  %v364_v53 = vmul.f32 %v348_v27, %v348_v27 }
  0xab   : > { %v1684_v38 = vpop.permute.xlu1 %310  ;;  %v437_v47 = vsub.f32 %v389_v60, %v1706_v8  ;;  %v438_v48 = vsub.f32 %v389_v60, %v1708_v9 }
  0xac   : > { %v349_v54 = vsub.f32 %v1684_v38, %v1676_v33  ;;  %v379_v6 = vadd.f32 %v363_v52, %v265_v49 }
  0xad   : > { %v453_v63 = vmul.f32 %v437_v47, %v437_v47  ;;  %v454_v0 = vmul.f32 %v438_v48, %v438_v48 }
  0xae   : > { %v401_v25 = vpop.permute.xlu0 %400  ;;  %v365_v7 = vmul.f32 %v349_v54, %v349_v54 }
  0xaf   : > { %v443_v30 = vsub.f32 %v401_v25, %v1706_v8  ;;  %v444_v51 = vsub.f32 %v401_v25, %v1708_v9  ;;  %v1742_v19 = vadd.f32 %v453_v63, %v371_v22  ;;  %v1744_v15 = vadd.f32 %v454_v0, %v372_v24 }
  0xb0   : > { %v393_v55 = vpop.permute.xlu1 %392  ;;  %v381_v27 = vadd.f32 %v365_v7, %v267_v42 }
  0xb1   : > { %v439_v44 = vsub.f32 %v393_v55, %v1706_v8  ;;  %v440_v45 = vsub.f32 %v393_v55, %v1708_v9  ;;  %v350_v55 = vsub.f32 %v1684_v38, %v1678_v34  ;;  %v459_v1 = vmul.f32 %v443_v30, %v443_v30 }
  0xb2   : > { %v405_v56 = vpop.permute.xlu0 %404  ;;  %v460_v2 = vmul.f32 %v444_v51, %v444_v51  ;;  %v380_v38 = vadd.f32 %v364_v53, %v266_v50 }
  0xb3   : > { %v455_v35 = vmul.f32 %v439_v44, %v439_v44  ;;  %v456_v57 = vmul.f32 %v440_v45, %v440_v45  ;;  %v445_v4 = vsub.f32 %v405_v56, %v1706_v8  ;;  %v446_v5 = vsub.f32 %v405_v56, %v1708_v9 }
  0xb4   : > { %v397_v10 = vpop.permute.xlu1 %396  ;;  %v366_v11 = vmul.f32 %v350_v55, %v350_v55  ;;  %v1748_v29 = vadd.f32 %v459_v1, %v377_v16  ;;  %v1750_v31 = vadd.f32 %v460_v2, %v378_v17 }
  0xb5   : > { %v441_v58 = vsub.f32 %v397_v10, %v1706_v8  ;;  %v442_v59 = vsub.f32 %v397_v10, %v1708_v9  ;;  %v1738_v12 = vadd.f32 %v455_v35, %v373_v32  ;;  %v1740_v13 = vadd.f32 %v456_v57, %v374_v36 }
  0xb6   : > { %v461_v37 = vmul.f32 %v445_v4, %v445_v4  ;;  %v462_v32 = vmul.f32 %v446_v5, %v446_v5  ;;  %v382_v36 = vadd.f32 %v366_v11, %v268_v43  ;;  %v417_v17 = vpop.permute.xlu0 %416 }
  0xb7   : > { %v457_v10 = vmul.f32 %v441_v58, %v441_v58  ;;  %v458_v14 = vmul.f32 %v442_v59, %v442_v59  ;;  %v495_v22 = vmin.f32 %v1738_v12, %v1748_v29  ;;  %v508_v24 = vmin.f32 %v1740_v13, %v1750_v31 }
  0xb8   : > { %v1764_v48 = vadd.f32 %v461_v37, %v379_v6  ;;  %v452_v51 = vsub.f32 %v417_v17, %v1708_v9 }
  0xb9   : > { %v215_v41 = vpop.permute.xlu1 %214  ;;  %v1758_v46 = vadd.f32 %v457_v10, %v375_v26  ;;  %v1760_v16 = vadd.f32 %v458_v14, %v376_v28  ;;  %v451_v28 = vsub.f32 %v417_v17, %v1706_v8 }
  0xba   : > { %v253_v23 = vsub.f32 %v215_v41, %v1686_v39  ;;  %v254_v42 = vsub.f32 %v215_v41, %v1688_v40  ;;  %v468_v2 = vmul.f32 %v452_v51, %v452_v51  ;;  %v1817_v51 = vadd.s32 56, %v1663_v20 }
  0xbb   : > { %v494_v39 = vmin.f32 %v1742_v19, %v1758_v46  ;;  %v507_v40 = vmin.f32 %v1744_v15, %v1760_v16  ;;  %v467_v1 = vmul.f32 %v451_v28, %v451_v28  ;;  %v1814_v28 = vadd.s32 48, %v1663_v20 }
  0xbc   : > { %v269_v53 = vmul.f32 %v253_v23, %v253_v23  ;;  %v270_v54 = vmul.f32 %v254_v42, %v254_v42 }
  0xbe   : > { %v315_v60 = vpop.permute.xlu1 %314 }
  0xbf   : > { %v351_v44 = vsub.f32 %v315_v60, %v1676_v33  ;;  %v352_v45 = vsub.f32 %v315_v60, %v1678_v34 }
  0xc1   : > { %v367_v26 = vmul.f32 %v351_v44, %v351_v44  ;;  %v368_v30 = vmul.f32 %v352_v45, %v352_v45 }
  0xc2   : > { %v319_v18 = vpop.permute.xlu1 %318 }
  0xc3   : > { %v353_v21 = vsub.f32 %v319_v18, %v1676_v33  ;;  %v354_v25 = vsub.f32 %v319_v18, %v1678_v34  ;;  %v1766_v34 = vadd.f32 %v462_v32, %v380_v38  ;;  %v383_v63 = vadd.f32 %v367_v26, %v269_v53 }
  0xc4   : > { %v384_v0 = vadd.f32 %v368_v30, %v270_v54  ;;  %v1808_v26 = vadd.s32 32, %v1663_v20  ;;  %v1811_v30 = vadd.s32 40, %v1663_v20 }
  0xc5   : > { %v369_v43 = vmul.f32 %v353_v21, %v353_v21  ;;  %v370_v47 = vmul.f32 %v354_v25, %v354_v25  ;;  %v509_v38 = vmin.f32 %v507_v40, %v1766_v34 }
  0xc7   : > { %v409_v33 = vpop.permute.xlu1 %408  ;;  %v385_v55 = vadd.f32 %v369_v43, %v271_v61  ;;  %v386_v56 = vadd.f32 %v370_v47, %v272_v62  ;;  %v496_v62 = vmin.f32 %v494_v39, %v1764_v48  ;;  %v1799_v43 = vadd.s32 8, %v1663_v20 }
  0xc8   : > { %v447_v49 = vsub.f32 %v409_v33, %v1706_v8  ;;  %v448_v50 = vsub.f32 %v409_v33, %v1708_v9  ;;  %v1802_v47 = vadd.s32 16, %v1663_v20  ;;  %v1805_v33 = vadd.s32 24, %v1663_v20 }
  0xc9   : > { %v1786_v7 = vadd.f32 %v467_v1, %v385_v55  ;;  %v1788_v11 = vadd.f32 %v468_v2, %v386_v56 }
  0xca   : > { %v463_v41 = vmul.f32 %v447_v49, %v447_v49  ;;  %v464_v52 = vmul.f32 %v448_v50, %v448_v50 }
  0xcb   : > { %v413_v35 = vpop.permute.xlu1 %412 }
  0xcc   : > { %v1776_v57 = vadd.f32 %v463_v41, %v381_v27  ;;  %v1778_v58 = vadd.f32 %v464_v52, %v382_v36  ;;  %v449_v59 = vsub.f32 %v413_v35, %v1706_v8  ;;  %v450_v60 = vsub.f32 %v413_v35, %v1708_v9 }
  0xce   : > { %v497_v4 = vmin.f32 %v495_v22, %v1776_v57  ;;  %v510_v5 = vmin.f32 %v508_v24, %v1778_v58  ;;  %v465_v6 = vmul.f32 %v449_v59, %v449_v59  ;;  %v466_v61 = vmul.f32 %v450_v60, %v450_v60 }
  0xd0   : > { %v1790_v8 = vadd.f32 %v465_v6, %v383_v63  ;;  %v1792_v9 = vadd.f32 %v466_v61, %v384_v0  ;;  %v499_v10 = vmin.f32 %v497_v4, %v1786_v7  ;;  %v512_v14 = vmin.f32 %v510_v5, %v1788_v11 }
  0xd2   : > { %v498_v18 = vmin.f32 %v496_v62, %v1790_v8  ;;  %v511_v21 = vmin.f32 %v509_v38, %v1792_v9 }
  0xd4   : > { %v500_v25 = vmin.f32 %v498_v18, %v499_v10  ;;  %v513_v37 = vmin.f32 %v511_v21, %v512_v14 }
  0xd6   : > { %v501_v32 = vrot.slane %v500_v25, 4  ;;  %v514_v27 = vrot.slane %v513_v37, 4 }
  0xd8   : > { %v502_v36 = vmin.f32 %v500_v25, %v501_v32  ;;  %v515_v44 = vmin.f32 %v513_v37, %v514_v27 }
  0xda   : > { %v503_v45 = vrot.slane %v502_v36, 2  ;;  %v516_v22 = vrot.slane %v515_v44, 2 }
  0xdc   : > { %v504_v24 = vmin.f32 %v502_v36, %v503_v45  ;;  %v517_v17 = vmin.f32 %v515_v44, %v516_v22 }
  0xde   : > { %v505_v23 = vrot.slane %v504_v24, 1  ;;  %v518_v42 = vrot.slane %v517_v17, 1 }
  0xe0   : > { %v506_v49 = vmin.f32 %v504_v24, %v505_v23  ;;  %v519_v50 = vmin.f32 %v517_v17, %v518_v42 }
  0xe2   : > { %vm520_vm0 = vcmp.eq.f32.partialorder %v1742_v19, %v506_v49  ;;  %vm521_vm1 = vcmp.eq.f32.partialorder %v1744_v15, %v519_v50  ;;  %vm522_vm2 = vcmp.eq.f32.partialorder %v1738_v12, %v506_v49  ;;  %vm523_vm3 = vcmp.eq.f32.partialorder %v1740_v13, %v519_v50 }
  0xe3   : > { %vm524_vm4 = vcmp.eq.f32.partialorder %v1758_v46, %v506_v49  ;;  %vm525_vm5 = vcmp.eq.f32.partialorder %v1760_v16, %v519_v50  ;;  %vm526_vm6 = vcmp.eq.f32.partialorder %v1748_v29, %v506_v49  ;;  %vm527_vm7 = vcmp.eq.f32.partialorder %v1750_v31, %v519_v50 }
  0xe4   : > { %vm528_vm8 = vcmp.eq.f32.partialorder %v1764_v48, %v506_v49  ;;  %vm529_vm9 = vcmp.eq.f32.partialorder %v1766_v34, %v519_v50  ;;  %vm530_vm10 = vcmp.eq.f32.partialorder %v1776_v57, %v506_v49  ;;  %vm531_vm11 = vcmp.eq.f32.partialorder %v1778_v58, %v519_v50 }
  0xe5   : > { %vm532_vm12 = vcmp.eq.f32.partialorder %v1790_v8, %v506_v49  ;;  %vm533_vm13 = vcmp.eq.f32.partialorder %v1792_v9, %v519_v50  ;;  %vm534_vm14 = vcmp.eq.f32.partialorder %v1786_v7, %v506_v49  ;;  %vm535_vm15 = vcmp.eq.f32.partialorder %v1788_v11, %v519_v50 }
  0xe6   : > { %v536_v39 = vsel %vm520_vm0, %v1663_v20, 64  ;;  %v537_v40 = vsel %vm521_vm1, %v1663_v20, 64  ;;  %v538_v41 = vsel %vm522_vm2, %v1799_v43, 64  ;;  %v539_v52 = vsel %vm523_vm3, %v1799_v43, 64 }
  0xe7   : > { %v540_v53 = vsel %vm524_vm4, %v1802_v47, 64  ;;  %v541_v54 = vsel %vm525_vm5, %v1802_v47, 64  ;;  %v542_v55 = vsel %vm526_vm6, %v1805_v33, 64  ;;  %v543_v56 = vsel %vm527_vm7, %v1805_v33, 64 }
  0xe8   : > { %v544_v35 = vsel %vm528_vm8, %v1808_v26, 64  ;;  %v545_v59 = vsel %vm529_vm9, %v1808_v26, 64  ;;  %v546_v60 = vsel %vm530_vm10, %v1811_v30, 64  ;;  %v547_v63 = vsel %vm531_vm11, %v1811_v30, 64 }
  0xe9   : > { %v548_v0 = vsel %vm532_vm12, %v1814_v28, 64  ;;  %v549_v1 = vsel %vm533_vm13, %v1814_v28, 64  ;;  %v550_v2 = vsel %vm534_vm14, %v1817_v51, 64  ;;  %v551_v4 = vsel %vm535_vm15, %v1817_v51, 64 }
  0xea   : > { %vm552_vm0 = vcmp.lt.s32.totalorder %v536_v39, %v540_v53  ;;  %vm554_vm1 = vcmp.lt.s32.totalorder %v538_v41, %v542_v55  ;;  %vm575_vm2 = vcmp.lt.s32.totalorder %v537_v40, %v541_v54  ;;  %vm577_vm3 = vcmp.lt.s32.totalorder %v539_v52, %v543_v56 }
  0xeb   : > { %v553_v5 = vsel %vm552_vm0, %v536_v39, %v540_v53  ;;  %v555_v6 = vsel %vm554_vm1, %v538_v41, %v542_v55  ;;  %v576_v61 = vsel %vm575_vm2, %v537_v40, %v541_v54  ;;  %v578_v62 = vsel %vm577_vm3, %v539_v52, %v543_v56 }
  0xec   : > { %vm556_vm4 = vcmp.lt.s32.totalorder %v553_v5, %v544_v35  ;;  %vm558_vm5 = vcmp.lt.s32.totalorder %v555_v6, %v546_v60  ;;  %vm579_vm6 = vcmp.lt.s32.totalorder %v576_v61, %v545_v59  ;;  %vm581_vm7 = vcmp.lt.s32.totalorder %v578_v62, %v547_v63 }
  0xed   : > { %v557_v38 = vsel %vm556_vm4, %v553_v5, %v544_v35  ;;  %v559_v10 = vsel %vm558_vm5, %v555_v6, %v546_v60  ;;  %v580_v14 = vsel %vm579_vm6, %v576_v61, %v545_v59  ;;  %v582_v18 = vsel %vm581_vm7, %v578_v62, %v547_v63  ;;  %v2030_v61 = vld [vmem:[%s2395_s2] sm:$0x3] }
  0xee   : > { %vm560_vm8 = vcmp.lt.s32.totalorder %v557_v38, %v548_v0  ;;  %vm562_vm9 = vcmp.lt.s32.totalorder %v559_v10, %v550_v2  ;;  %vm583_vm10 = vcmp.lt.s32.totalorder %v580_v14, %v549_v1  ;;  %vm585_vm11 = vcmp.lt.s32.totalorder %v582_v18, %v551_v4 }
  0xef   : > { %v561_v21 = vsel %vm560_vm8, %v557_v38, %v548_v0  ;;  %v563_v25 = vsel %vm562_vm9, %v559_v10, %v550_v2  ;;  %v584_v37 = vsel %vm583_vm10, %v580_v14, %v549_v1  ;;  %v586_v32 = vsel %vm585_vm11, %v582_v18, %v551_v4 }
  0xf0   : > { %vm564_vm12 = vcmp.lt.s32.totalorder %v561_v21, %v563_v25  ;;  %vm587_vm13 = vcmp.lt.s32.totalorder %v584_v37, %v586_v32  ;;  %v1561_v52 = vmov 1.0|1.0  }
  0xf1   : > { %v565_v27 = vsel %vm564_vm12, %v561_v21, %v563_v25  ;;  %v588_v36 = vsel %vm587_vm13, %v584_v37, %v586_v32 }
  0xf2   : > { %v566_v44 = vrot.slane %v565_v27, 4  ;;  %v589_v45 = vrot.slane %v588_v36, 4 }
  0xf4   : > { %vm567_vm14 = vcmp.lt.s32.totalorder %v565_v27, %v566_v44  ;;  %vm590_vm15 = vcmp.lt.s32.totalorder %v588_v36, %v589_v45 }
  0xf5   : > { %v568_v22 = vsel %vm567_vm14, %v565_v27, %v566_v44  ;;  %v591_v24 = vsel %vm590_vm15, %v588_v36, %v589_v45 }
  0xf6   : > { %v569_v17 = vrot.slane %v568_v22, 2  ;;  %v592_v23 = vrot.slane %v591_v24, 2 }
  0xf8   : > { %vm570_vm0 = vcmp.lt.s32.totalorder %v568_v22, %v569_v17  ;;  %vm593_vm1 = vcmp.lt.s32.totalorder %v591_v24, %v592_v23 }
  0xf9   : > { %v571_v42 = vsel %vm570_vm0, %v568_v22, %v569_v17  ;;  %v594_v49 = vsel %vm593_vm1, %v591_v24, %v592_v23 }
  0xfa   : > { %v572_v50 = vrot.slane %v571_v42, 1  ;;  %v595_v39 = vrot.slane %v594_v49, 1 }
  0xfc   : > { %vm573_vm2 = vcmp.lt.s32.totalorder %v571_v42, %v572_v50  ;;  %vm596_vm3 = vcmp.lt.s32.totalorder %v594_v49, %v595_v39 }
  0xfd   : > { %v597_v40 = vsel %vm596_vm3, %v594_v49, %v595_v39  ;;  %v574_v41 = vsel %vm573_vm2, %v571_v42, %v572_v50 }
  0xfe   : > { %vm611_vm4 = vcmp.eq.s32.totalorder %v1814_v28, %v597_v40  ;;  %vm613_vm5 = vcmp.eq.s32.totalorder %v1817_v51, %v597_v40  ;;  %vm2398_vm6 = vcmp.eq.s32.totalorder %v1814_v28, %v574_v41  ;;  %vm2397_vm7 = vcmp.eq.s32.totalorder %v1817_v51, %v574_v41 }
  0xff   : > { %vm1366_vm8 = vmpackc.low %vm613_vm5, %vm611_vm4  ;;  %vm607_vm10 = vcmp.eq.s32.totalorder %v1808_v26, %v597_v40  ;;  %vm609_vm11 = vcmp.eq.s32.totalorder %v1811_v30, %v597_v40  ;;  %vm606_vm13 = vcmp.eq.s32.totalorder %v1808_v26, %v574_v41  ;;  %vm608_vm14 = vcmp.eq.s32.totalorder %v1811_v30, %v574_v41 }
 0x100   : > { %1367 = vmatprep.subr.msk.bf16.mxu0 %vm1366_vm8, %v1561_v52  ;;  %vm1368_vm9 = vmpackc.low %vm2397_vm7, %vm2398_vm6  ;;  %vm603_vm15 = vcmp.eq.s32.totalorder %v1802_v47, %v597_v40  ;;  %vm605_vm0 = vcmp.eq.s32.totalorder %v1805_v33, %v597_v40  ;;  %vm602_vm1 = vcmp.eq.s32.totalorder %v1802_v47, %v574_v41  ;;  %vm604_vm2 = vcmp.eq.s32.totalorder %v1805_v33, %v574_v41 }
 0x101   : > { %1369 = vmatpush1.bf16.msk.msra.mxu0 %vm1368_vm9, %v1561_v52  ;;  %vm1370_vm12 = vmpackc.low %vm609_vm11, %vm607_vm10  ;;  %v1911_v53 = vsel %vm603_vm15, inf, %v1760_v16  ;;  %v1914_v54 = vsel %vm605_vm0, inf, %v1750_v31  ;;  %v1919_v55 = vsel %vm602_vm1, inf, %v1758_v46  ;;  %v1924_v56 = vsel %vm604_vm2, inf, %v1748_v29 }
 0x102   : > { %1371 = vmatprep.subr.msk.bf16.mxu0 %vm1370_vm12, %v1561_v52  ;;  %vm1372_vm3 = vmpackc.low %vm608_vm14, %vm606_vm13  ;;  %vm599_vm8 = vcmp.eq.s32.totalorder %v1663_v20, %v597_v40  ;;  %vm601_vm9 = vcmp.eq.s32.totalorder %v1799_v43, %v597_v40  ;;  %vm598_vm12 = vcmp.eq.s32.totalorder %v1663_v20, %v574_v41  ;;  %vm600_vm7 = vcmp.eq.s32.totalorder %v1799_v43, %v574_v41 }
 0x103   : > { %vm1374_vm6 = vmpackc.low %vm605_vm0, %vm603_vm15  ;;  %v1938_v29 = vsel %vm599_vm8, inf, %v1744_v15  ;;  %v1943_v31 = vsel %vm601_vm9, inf, %v1740_v13  ;;  %v1948_v46 = vsel %vm598_vm12, inf, %v1742_v19  ;;  %v1953_v16 = vsel %vm600_vm7, inf, %v1738_v12 }
 0x104   : > { %v683_v15 = vmin.f32 %v1938_v29, %v1911_v53  ;;  %v684_v35 = vmin.f32 %v1943_v31, %v1914_v54  ;;  %v670_v13 = vmin.f32 %v1948_v46, %v1919_v55  ;;  %v671_v19 = vmin.f32 %v1953_v16, %v1924_v56 }
 0x105   : > { %1373 = vmatpush1.bf16.msk.msra.mxu0 %vm1372_vm3, %v1561_v52  ;;  %v1967_v59 = vsel %vm607_vm10, inf, %v1766_v34  ;;  %v1972_v12 = vsel %vm609_vm11, inf, %v1778_v58  ;;  %v1977_v60 = vsel %vm606_vm13, inf, %v1764_v48  ;;  %v1982_v63 = vsel %vm608_vm14, inf, %v1776_v57 }
 0x106   : > { %1375 = vmatprep.subr.msk.bf16.mxu0 %vm1374_vm6, %v1561_v52  ;;  %vm1376_vm6 = vmpackc.low %vm604_vm2, %vm602_vm1  ;;  %v685_v34 = vmin.f32 %v683_v15, %v1967_v59  ;;  %v686_v58 = vmin.f32 %v684_v35, %v1972_v12  ;;  %v672_v0 = vmin.f32 %v670_v13, %v1977_v60  ;;  %v673_v1 = vmin.f32 %v671_v19, %v1982_v63 }
 0x107   : > { %v1995_v48 = vsel %vm611_vm4, inf, %v1792_v9  ;;  %v2000_v57 = vsel %vm613_vm5, inf, %v1788_v11  ;;  %vm2401_vm10 = vcmp.eq.s32.totalorder %v1814_v28, %v574_v41  ;;  %vm2402_vm11 = vcmp.eq.s32.totalorder %v1817_v51, %v574_v41  ;;  %vm1378_vm4 = vmpackc.low %vm601_vm9, %vm599_vm8 }
 0x108   : > { %v2005_v2 = vsel %vm2401_vm10, inf, %v1790_v8  ;;  %v2010_v4 = vsel %vm2402_vm11, inf, %v1786_v7  ;;  %v687_v11 = vmin.f32 %v685_v34, %v1995_v48  ;;  %v688_v9 = vmin.f32 %v686_v58, %v2000_v57  ;;  %vm1380_vm5 = vmpackc.low %vm600_vm7, %vm598_vm12 }
 0x109   : > { %1377 = vmatpush1.bf16.msk.msra.mxu0 %vm1376_vm6, %v1561_v52  ;;  %v674_v8 = vmin.f32 %v672_v0, %v2005_v2  ;;  %v675_v5 = vmin.f32 %v673_v1, %v2010_v4  ;;  %vm1007_vm13 = vcmask 523264  }
 0x10a   : > { %1379 = vmatprep.subr.msk.bf16.mxu0 %vm1378_vm4, %v1561_v52  ;;  %v689_v6 = vmin.f32 %v687_v11, %v688_v9 }
 0x10b   : > { %v676_v7 = vmin.f32 %v674_v8, %v675_v5 }
 0x10c   : > { %v690_v62 = vrot.slane %v689_v6, 4 }
 0x10d   : > { %1381 = vmatpush1.bf16.msk.msra.mxu0 %vm1380_vm5, %v1561_v52  ;;  %v677_v38 = vrot.slane %v676_v7, 4 }
 0x10e   : > { %v691_v10 = vmin.f32 %v689_v6, %v690_v62 }
 0x10f   : > { %v678_v14 = vmin.f32 %v676_v7, %v677_v38 }
 0x110   : > { %1382 = vmatmul.mubr.msk.bf16.vlgmr.msra.gmra.mxu0 %vm1007_vm13, %v2030_v61  ;;  %v692_v18 = vrot.slane %v691_v10, 2 }
 0x111   : > { %1125 = vmatprep.mubr.bf16.mxu0 %v1559_v3  ;;  %v679_v21 = vrot.slane %v678_v14, 2 }
 0x112   : > { %v693_v25 = vmin.f32 %v691_v10, %v692_v18 }
 0x113   : > { %v680_v37 = vmin.f32 %v678_v14, %v679_v21 }
 0x114   : > { %v694_v32 = vrot.slane %v693_v25, 1 }
 0x115   : > { %v681_v27 = vrot.slane %v680_v37, 1 }
 0x116   : > { %v695_v36 = vmin.f32 %v693_v25, %v694_v32 }
 0x117   : > { %v682_v44 = vmin.f32 %v680_v37, %v681_v27 }
 0x118   : > { %vm697_vm7 = vcmp.eq.f32.partialorder %v1938_v29, %v695_v36  ;;  %vm699_vm14 = vcmp.eq.f32.partialorder %v1943_v31, %v695_v36  ;;  %vm701_vm1 = vcmp.eq.f32.partialorder %v1911_v53, %v695_v36  ;;  %vm703_vm2 = vcmp.eq.f32.partialorder %v1914_v54, %v695_v36 }
 0x119   : > { %v713_v45 = vsel %vm697_vm7, %v1663_v20, 64  ;;  %vm696_vm15 = vcmp.eq.f32.partialorder %v1948_v46, %v682_v44  ;;  %vm698_vm0 = vcmp.eq.f32.partialorder %v1953_v16, %v682_v44  ;;  %v715_v3 = vsel %vm699_vm14, %v1799_v43, 64 }
 0x11a   : > { %vm705_vm3 = vcmp.eq.f32.partialorder %v1967_v59, %v695_v36  ;;  %vm707_vm8 = vcmp.eq.f32.partialorder %v1972_v12, %v695_v36  ;;  %vm709_vm9 = vcmp.eq.f32.partialorder %v1995_v48, %v695_v36  ;;  %v717_v22 = vsel %vm701_vm1, %v1802_v47, 64 }
 0x11b   : > { %v719_v24 = vsel %vm703_vm2, %v1805_v33, 64  ;;  %v712_v17 = vsel %vm696_vm15, %v1663_v20, 64  ;;  %v714_v23 = vsel %vm698_vm0, %v1799_v43, 64  ;;  %vm711_vm12 = vcmp.eq.f32.partialorder %v2000_v57, %v695_v36 }
 0x11c   : > { %v721_v42 = vsel %vm705_vm3, %v1808_v26, 64  ;;  %vm751_vm6 = vcmp.lt.s32.totalorder %v713_v45, %v717_v22  ;;  %vm753_vm10 = vcmp.lt.s32.totalorder %v715_v3, %v719_v24  ;;  %vm700_vm11 = vcmp.eq.f32.partialorder %v1919_v55, %v682_v44 }
 0x11d   : > { %vm702_vm4 = vcmp.eq.f32.partialorder %v1924_v56, %v682_v44  ;;  %v723_v49 = vsel %vm707_vm8, %v1811_v30, 64  ;;  %v725_v50 = vsel %vm709_vm9, %v1814_v28, 64  ;;  %v752_v39 = vsel %vm751_vm6, %v713_v45, %v717_v22 }
 0x11e   : > { %v754_v40 = vsel %vm753_vm10, %v715_v3, %v719_v24  ;;  %v727_v41 = vsel %vm711_vm12, %v1817_v51, 64  ;;  %vm755_vm5 = vcmp.lt.s32.totalorder %v752_v39, %v721_v42  ;;  %vm704_vm14 = vcmp.eq.f32.partialorder %v1977_v60, %v682_v44 }
 0x11f   : > { %vm757_vm7 = vcmp.lt.s32.totalorder %v754_v40, %v723_v49  ;;  %v756_v15 = vsel %vm755_vm5, %v752_v39, %v721_v42  ;;  %v716_v13 = vsel %vm700_vm11, %v1802_v47, 64  ;;  %v718_v19 = vsel %vm702_vm4, %v1805_v33, 64 }
 0x120   : > { %v758_v35 = vsel %vm757_vm7, %v754_v40, %v723_v49  ;;  %vm759_vm15 = vcmp.lt.s32.totalorder %v756_v15, %v725_v50  ;;  %vm706_vm1 = vcmp.eq.f32.partialorder %v1982_v63, %v682_v44  ;;  %vm708_vm2 = vcmp.eq.f32.partialorder %v2005_v2, %v682_v44 }
 0x121   : > { %vm761_vm0 = vcmp.lt.s32.totalorder %v758_v35, %v727_v41  ;;  %v760_v34 = vsel %vm759_vm15, %v756_v15, %v725_v50  ;;  %vm710_vm3 = vcmp.eq.f32.partialorder %v2010_v4, %v682_v44  ;;  %v720_v0 = vsel %vm704_vm14, %v1808_v26, 64 }
 0x122   : > { %v762_v58 = vsel %vm761_vm0, %v758_v35, %v727_v41  ;;  %vm728_vm9 = vcmp.lt.s32.totalorder %v712_v17, %v716_v13  ;;  %vm730_vm12 = vcmp.lt.s32.totalorder %v714_v23, %v718_v19  ;;  %v722_v11 = vsel %vm706_vm1, %v1811_v30, 64 }
 0x123   : > { %vm763_vm8 = vcmp.lt.s32.totalorder %v760_v34, %v762_v58  ;;  %v729_v9 = vsel %vm728_vm9, %v712_v17, %v716_v13  ;;  %v731_v8 = vsel %vm730_vm12, %v714_v23, %v718_v19  ;;  %v724_v6 = vsel %vm708_vm2, %v1814_v28, 64 }
 0x124   : > { %v764_v1 = vsel %vm763_vm8, %v760_v34, %v762_v58  ;;  %vm732_vm6 = vcmp.lt.s32.totalorder %v729_v9, %v720_v0  ;;  %vm734_vm10 = vcmp.lt.s32.totalorder %v731_v8, %v722_v11  ;;  %v726_v7 = vsel %vm710_vm3, %v1817_v51, 64 }
 0x125   : > { %v765_v5 = vrot.slane %v764_v1, 4  ;;  %v733_v62 = vsel %vm732_vm6, %v729_v9, %v720_v0  ;;  %v735_v38 = vsel %vm734_vm10, %v731_v8, %v722_v11 }
 0x126   : > { %vm736_vm4 = vcmp.lt.s32.totalorder %v733_v62, %v724_v6  ;;  %vm738_vm5 = vcmp.lt.s32.totalorder %v735_v38, %v726_v7 }
 0x127   : > { %vm766_vm11 = vcmp.lt.s32.totalorder %v764_v1, %v765_v5  ;;  %v737_v14 = vsel %vm736_vm4, %v733_v62, %v724_v6  ;;  %v739_v18 = vsel %vm738_vm5, %v735_v38, %v726_v7 }
 0x128   : > { %v767_v10 = vsel %vm766_vm11, %v764_v1, %v765_v5  ;;  %vm740_vm7 = vcmp.lt.s32.totalorder %v737_v14, %v739_v18 }
 0x129   : > { %v768_v21 = vrot.slane %v767_v10, 2  ;;  %v741_v25 = vsel %vm740_vm7, %v737_v14, %v739_v18 }
 0x12a   : > { %v742_v37 = vrot.slane %v741_v25, 4 }
 0x12b   : > { %vm769_vm14 = vcmp.lt.s32.totalorder %v767_v10, %v768_v21 }
 0x12c   : > { %v770_v32 = vsel %vm769_vm14, %v767_v10, %v768_v21  ;;  %vm743_vm15 = vcmp.lt.s32.totalorder %v741_v25, %v742_v37 }
 0x12d   : > { %v771_v27 = vrot.slane %v770_v32, 1  ;;  %v744_v36 = vsel %vm743_vm15, %v741_v25, %v742_v37 }
 0x12e   : > { %v745_v45 = vrot.slane %v744_v36, 2 }
 0x12f   : > { %vm772_vm0 = vcmp.lt.s32.totalorder %v770_v32, %v771_v27 }
 0x130   : > { %v2067_v44 = vsel %vm772_vm0, %v770_v32, %v771_v27  ;;  %vm746_vm4 = vcmp.lt.s32.totalorder %v744_v36, %v745_v45 }
 0x131   : > { %vm775_vm1 = vcmp.eq.s32.totalorder %v1663_v20, %v2067_v44  ;;  %vm777_vm2 = vcmp.eq.s32.totalorder %v1799_v43, %v2067_v44  ;;  %vm779_vm3 = vcmp.eq.s32.totalorder %v1802_v47, %v2067_v44  ;;  %vm781_vm8 = vcmp.eq.s32.totalorder %v1805_v33, %v2067_v44 }
 0x132   : > { %vm783_vm9 = vcmp.eq.s32.totalorder %v1808_v26, %v2067_v44  ;;  %vm785_vm12 = vcmp.eq.s32.totalorder %v1811_v30, %v2067_v44  ;;  %vm787_vm6 = vcmp.eq.s32.totalorder %v1814_v28, %v2067_v44  ;;  %vm789_vm10 = vcmp.eq.s32.totalorder %v1817_v51, %v2067_v44 }
 0x133   : > { %v2089_v3 = vsel %vm775_vm1, inf, %v1938_v29  ;;  %v2095_v22 = vsel %vm777_vm2, inf, %v1943_v31  ;;  %v2101_v24 = vsel %vm779_vm3, inf, %v1911_v53  ;;  %v2107_v17 = vsel %vm781_vm8, inf, %v1914_v54  ;;  %vm1383_vm11 = vmpackc.low %vm789_vm10, %vm787_vm6 }
 0x134   : > { %1384 = vmatprep.subr.msk.bf16.mxu1 %vm1383_vm11, %v1561_v52  ;;  %v859_v29 = vmin.f32 %v2089_v3, %v2101_v24  ;;  %v860_v53 = vmin.f32 %v2095_v22, %v2107_v17  ;;  %v2124_v54 = vsel %vm783_vm9, inf, %v1967_v59  ;;  %v2130_v31 = vsel %vm785_vm12, inf, %v1972_v12 }
 0x135   : > { %v747_v23 = vsel %vm746_vm4, %v744_v36, %v745_v45  ;;  %v2138_v39 = vsel %vm787_vm6, inf, %v1995_v48  ;;  %v2144_v59 = vsel %vm789_vm10, inf, %v2000_v57  ;;  %vm1387_vm6 = vmpackc.low %vm785_vm12, %vm783_vm9 }
 0x136   : > { %v861_v42 = vmin.f32 %v859_v29, %v2124_v54  ;;  %v862_v49 = vmin.f32 %v860_v53, %v2130_v31  ;;  %v748_v50 = vrot.slane %v747_v23, 1 }
 0x138   : > { %v863_v12 = vmin.f32 %v861_v42, %v2138_v39  ;;  %v864_v40 = vmin.f32 %v862_v49, %v2144_v59  ;;  %vm749_vm5 = vcmp.lt.s32.totalorder %v747_v23, %v748_v50 }
 0x139   : > { %v750_v41 = vsel %vm749_vm5, %v747_v23, %v748_v50 }
 0x13a   : > { %v865_v15 = vmin.f32 %v863_v12, %v864_v40  ;;  %vm786_vm7 = vcmp.eq.s32.totalorder %v1814_v28, %v750_v41  ;;  %vm788_vm14 = vcmp.eq.s32.totalorder %v1817_v51, %v750_v41  ;;  %vm782_vm0 = vcmp.eq.s32.totalorder %v1808_v26, %v750_v41 }
 0x13b   : > { %vm1385_vm15 = vmpackc.low %vm788_vm14, %vm786_vm7  ;;  %vm784_vm10 = vcmp.eq.s32.totalorder %v1811_v30, %v750_v41  ;;  %vm778_vm11 = vcmp.eq.s32.totalorder %v1802_v47, %v750_v41  ;;  %vm780_vm4 = vcmp.eq.s32.totalorder %v1805_v33, %v750_v41  ;;  %vm774_vm9 = vcmp.eq.s32.totalorder %v1663_v20, %v750_v41 }
 0x13c   : > { %v866_v48 = vrot.slane %v865_v15, 4  ;;  %1386 = vmatpush1.bf16.msk.msra.mxu1 %vm1385_vm15, %v1561_v52  ;;  %v2169_v57 = vsel %vm778_vm11, inf, %v1919_v55  ;;  %v2174_v35 = vsel %vm780_vm4, inf, %v1924_v56  ;;  %vm776_vm12 = vcmp.eq.s32.totalorder %v1799_v43, %v750_v41  ;;  %vm1389_vm5 = vmpackc.low %vm784_vm10, %vm782_vm0 }
 0x13d   : > { %1388 = vmatprep.subr.msk.bf16.mxu1 %vm1387_vm6, %v1561_v52  ;;  %v2181_v19 = vsel %vm774_vm9, inf, %v1948_v46  ;;  %v2186_v55 = vsel %vm776_vm12, inf, %v1953_v16  ;;  %v2199_v46 = vsel %vm782_vm0, inf, %v1977_v60  ;;  %v2204_v16 = vsel %vm784_vm10, inf, %v1982_v63  ;;  %vm1391_vm15 = vmpackc.low %vm781_vm8, %vm779_vm3 }
 0x13e   : > { %v867_v13 = vmin.f32 %v865_v15, %v866_v48  ;;  %v846_v56 = vmin.f32 %v2181_v19, %v2169_v57  ;;  %v847_v34 = vmin.f32 %v2186_v55, %v2174_v35  ;;  %v2219_v63 = vsel %vm786_vm7, inf, %v2005_v2  ;;  %vm1393_vm3 = vmpackc.low %vm780_vm4, %vm778_vm11 }
 0x13f   : > { %v2224_v11 = vsel %vm788_vm14, inf, %v2010_v4  ;;  %vm1395_vm8 = vmpackc.low %vm777_vm2, %vm775_vm1 }
 0x140   : > { %v868_v58 = vrot.slane %v867_v13, 2  ;;  %1390 = vmatpush1.bf16.msk.msra.mxu1 %vm1389_vm5, %v1561_v52  ;;  %v848_v0 = vmin.f32 %v846_v56, %v2199_v46  ;;  %v849_v60 = vmin.f32 %v847_v34, %v2204_v16  ;;  %vm1397_vm7 = vmpackc.low %vm776_vm12, %vm774_vm9 }
 0x141   : > { %1392 = vmatprep.subr.msk.bf16.mxu1 %vm1391_vm15, %v1561_v52 }
 0x142   : > { %v869_v1 = vmin.f32 %v867_v13, %v868_v58  ;;  %v850_v9 = vmin.f32 %v848_v0, %v2219_v63  ;;  %v851_v8 = vmin.f32 %v849_v60, %v2224_v11 }
 0x144   : > { %v870_v5 = vrot.slane %v869_v1, 1  ;;  %1394 = vmatpush1.bf16.msk.msra.mxu1 %vm1393_vm3, %v1561_v52  ;;  %v852_v2 = vmin.f32 %v850_v9, %v851_v8 }
 0x145   : > { %1396 = vmatprep.subr.msk.bf16.mxu1 %vm1395_vm8, %v1561_v52 }
 0x146   : > { %v871_v4 = vmin.f32 %v869_v1, %v870_v5  ;;  %v853_v6 = vrot.slane %v852_v2, 4 }
 0x148   : > { %vm873_vm14 = vcmp.eq.f32.partialorder %v2089_v3, %v871_v4  ;;  %vm875_vm0 = vcmp.eq.f32.partialorder %v2095_v22, %v871_v4  ;;  %vm877_vm6 = vcmp.eq.f32.partialorder %v2101_v24, %v871_v4  ;;  %vm879_vm10 = vcmp.eq.f32.partialorder %v2107_v17, %v871_v4  ;;  %1398 = vmatpush1.bf16.msk.msra.mxu1 %vm1397_vm7, %v1561_v52 }
 0x149   : > { %vm881_vm1 = vcmp.eq.f32.partialorder %v2124_v54, %v871_v4  ;;  %vm883_vm2 = vcmp.eq.f32.partialorder %v2130_v31, %v871_v4  ;;  %v889_v7 = vsel %vm873_vm14, %v1663_v20, 64  ;;  %v891_v62 = vsel %vm875_vm0, %v1799_v43, 64 }
 0x14a   : > { %v893_v38 = vsel %vm877_vm6, %v1802_v47, 64  ;;  %v895_v10 = vsel %vm879_vm10, %v1805_v33, 64  ;;  %vm885_vm11 = vcmp.eq.f32.partialorder %v2138_v39, %v871_v4  ;;  %vm887_vm4 = vcmp.eq.f32.partialorder %v2144_v59, %v871_v4 }
 0x14b   : > { %1399 = vmatmul.mubr.msk.bf16.vlgmr.msra.gmra.mxu1 %vm1007_vm13, %v2030_v61  ;;  %vm927_vm9 = vcmp.lt.s32.totalorder %v889_v7, %v893_v38  ;;  %vm929_vm12 = vcmp.lt.s32.totalorder %v891_v62, %v895_v10  ;;  %v854_v14 = vmin.f32 %v852_v2, %v853_v6  ;;  %v897_v18 = vsel %vm881_vm1, %v1808_v26, 64 }
 0x14c   : > { %v899_v21 = vsel %vm883_vm2, %v1811_v30, 64  ;;  %v928_v25 = vsel %vm927_vm9, %v889_v7, %v893_v38  ;;  %v930_v37 = vsel %vm929_vm12, %v891_v62, %v895_v10  ;;  %v901_v27 = vsel %vm885_vm11, %v1814_v28, 64 }
 0x14d   : > { %vm931_vm5 = vcmp.lt.s32.totalorder %v928_v25, %v897_v18  ;;  %vm933_vm15 = vcmp.lt.s32.totalorder %v930_v37, %v899_v21  ;;  %v855_v32 = vrot.slane %v854_v14, 2  ;;  %v903_v36 = vsel %vm887_vm4, %v1817_v51, 64 }
 0x14e   : > { %v932_v44 = vsel %vm931_vm5, %v928_v25, %v897_v18  ;;  %v934_v45 = vsel %vm933_vm15, %v930_v37, %v899_v21 }
 0x14f   : > { %vm935_vm3 = vcmp.lt.s32.totalorder %v932_v44, %v901_v27  ;;  %vm937_vm8 = vcmp.lt.s32.totalorder %v934_v45, %v903_v36  ;;  %v856_v3 = vmin.f32 %v854_v14, %v855_v32 }
 0x150   : > { %v936_v22 = vsel %vm935_vm3, %v932_v44, %v901_v27  ;;  %v938_v24 = vsel %vm937_vm8, %v934_v45, %v903_v36 }
 0x151   : > { %vm939_vm7 = vcmp.lt.s32.totalorder %v936_v22, %v938_v24  ;;  %v857_v17 = vrot.slane %v856_v3, 1 }
 0x152   : > { %v940_v29 = vsel %vm939_vm7, %v936_v22, %v938_v24 }
 0x153   : > { %v941_v53 = vrot.slane %v940_v29, 4  ;;  %v858_v54 = vmin.f32 %v856_v3, %v857_v17 }
 0x155   : > { %vm942_vm14 = vcmp.lt.s32.totalorder %v940_v29, %v941_v53  ;;  %vm872_vm0 = vcmp.eq.f32.partialorder %v2181_v19, %v858_v54  ;;  %vm874_vm6 = vcmp.eq.f32.partialorder %v2186_v55, %v858_v54  ;;  %vm876_vm10 = vcmp.eq.f32.partialorder %v2169_v57, %v858_v54 }
 0x156   : > { %v943_v31 = vsel %vm942_vm14, %v940_v29, %v941_v53  ;;  %vm878_vm1 = vcmp.eq.f32.partialorder %v2174_v35, %v858_v54  ;;  %v888_v42 = vsel %vm872_vm0, %v1663_v20, 64  ;;  %v890_v49 = vsel %vm874_vm6, %v1799_v43, 64 }
 0x157   : > { %v944_v23 = vrot.slane %v943_v31, 2  ;;  %vm880_vm2 = vcmp.eq.f32.partialorder %v2199_v46, %v858_v54  ;;  %vm882_vm11 = vcmp.eq.f32.partialorder %v2204_v16, %v858_v54  ;;  %v892_v50 = vsel %vm876_vm10, %v1802_v47, 64 }
 0x158   : > { %v894_v39 = vsel %vm878_vm1, %v1805_v33, 64  ;;  %vm884_vm9 = vcmp.eq.f32.partialorder %v2219_v63, %v858_v54  ;;  %vm886_vm12 = vcmp.eq.f32.partialorder %v2224_v11, %v858_v54  ;;  %v896_v12 = vsel %vm880_vm2, %v1808_v26, 64 }
 0x159   : > { %vm945_vm4 = vcmp.lt.s32.totalorder %v943_v31, %v944_v23  ;;  %vm904_vm5 = vcmp.lt.s32.totalorder %v888_v42, %v892_v50  ;;  %vm906_vm15 = vcmp.lt.s32.totalorder %v890_v49, %v894_v39  ;;  %v898_v41 = vsel %vm882_vm11, %v1811_v30, 64 }
 0x15a   : > { %v946_v59 = vsel %vm945_vm4, %v943_v31, %v944_v23  ;;  %v905_v15 = vsel %vm904_vm5, %v888_v42, %v892_v50  ;;  %v907_v48 = vsel %vm906_vm15, %v890_v49, %v894_v39  ;;  %v900_v57 = vsel %vm884_vm9, %v1814_v28, 64 }
 0x15b   : > { %v947_v40 = vrot.slane %v946_v59, 1  ;;  %vm908_vm3 = vcmp.lt.s32.totalorder %v905_v15, %v896_v12  ;;  %vm910_vm8 = vcmp.lt.s32.totalorder %v907_v48, %v898_v41  ;;  %v902_v35 = vsel %vm886_vm12, %v1817_v51, 64 }
 0x15c   : > { %v909_v13 = vsel %vm908_vm3, %v905_v15, %v896_v12  ;;  %v911_v19 = vsel %vm910_vm8, %v907_v48, %v898_v41 }
 0x15d   : > { %vm948_vm7 = vcmp.lt.s32.totalorder %v946_v59, %v947_v40  ;;  %vm912_vm14 = vcmp.lt.s32.totalorder %v909_v13, %v900_v57  ;;  %vm914_vm0 = vcmp.lt.s32.totalorder %v911_v19, %v902_v35 }
 0x15e   : > { %v949_v55 = vsel %vm948_vm7, %v946_v59, %v947_v40  ;;  %v913_v56 = vsel %vm912_vm14, %v909_v13, %v900_v57  ;;  %v915_v34 = vsel %vm914_vm0, %v911_v19, %v902_v35 }
 0x15f   : > { %vm963_vm6 = vcmp.eq.s32.totalorder %v1814_v28, %v949_v55  ;;  %vm965_vm10 = vcmp.eq.s32.totalorder %v1817_v51, %v949_v55  ;;  %vm916_vm2 = vcmp.lt.s32.totalorder %v913_v56, %v915_v34  ;;  %vm959_vm12 = vcmp.eq.s32.totalorder %v1808_v26, %v949_v55 }
 0x160   : > { %vm1400_vm1 = vmpackc.low %vm965_vm10, %vm963_vm6  ;;  %v917_v58 = vsel %vm916_vm2, %v913_v56, %v915_v34  ;;  %vm961_vm5 = vcmp.eq.s32.totalorder %v1811_v30, %v949_v55  ;;  %vm955_vm6 = vcmp.eq.s32.totalorder %v1802_v47, %v949_v55  ;;  %vm957_vm10 = vcmp.eq.s32.totalorder %v1805_v33, %v949_v55 }
 0x161   : > { %1401 = vmatprep.subr.msk.bf16.mxu0 %vm1400_vm1, %v1561_v52  ;;  %v918_v46 = vrot.slane %v917_v58, 4  ;;  %vm1404_vm7 = vmpackc.low %vm961_vm5, %vm959_vm12  ;;  %vm953_vm12 = vcmp.eq.s32.totalorder %v1799_v43, %v949_v55 }
 0x162   : > { %vm1408_vm2 = vmpackc.low %vm957_vm10, %vm955_vm6 }
 0x163   : > { %vm919_vm11 = vcmp.lt.s32.totalorder %v917_v58, %v918_v46 }
 0x164   : > { %v920_v16 = vsel %vm919_vm11, %v917_v58, %v918_v46 }
 0x165   : > { %v921_v0 = vrot.slane %v920_v16, 2 }
 0x167   : > { %vm922_vm4 = vcmp.lt.s32.totalorder %v920_v16, %v921_v0 }
 0x168   : > { %v923_v60 = vsel %vm922_vm4, %v920_v16, %v921_v0 }
 0x169   : > { %v924_v1 = vrot.slane %v923_v60, 1 }
 0x16b   : > { %vm925_vm9 = vcmp.lt.s32.totalorder %v923_v60, %v924_v1 }
 0x16c   : > { %v926_v63 = vsel %vm925_vm9, %v923_v60, %v924_v1  ;;  %vm951_vm9 = vcmp.eq.s32.totalorder %v1663_v20, %v949_v55 }
 0x16d   : > { %vm962_vm15 = vcmp.eq.s32.totalorder %v1814_v28, %v926_v63  ;;  %vm964_vm3 = vcmp.eq.s32.totalorder %v1817_v51, %v926_v63  ;;  %vm958_vm14 = vcmp.eq.s32.totalorder %v1808_v26, %v926_v63  ;;  %vm960_vm0 = vcmp.eq.s32.totalorder %v1811_v30, %v926_v63 }
 0x16e   : > { %vm1402_vm8 = vmpackc.low %vm964_vm3, %vm962_vm15  ;;  %vm954_vm11 = vcmp.eq.s32.totalorder %v1802_v47, %v926_v63  ;;  %vm956_vm4 = vcmp.eq.s32.totalorder %v1805_v33, %v926_v63  ;;  %vm950_vm3 = vcmp.eq.s32.totalorder %v1663_v20, %v926_v63 }
 0x16f   : > { %1403 = vmatpush1.bf16.msk.msra.mxu0 %vm1402_vm8, %v1561_v52  ;;  %vm1406_vm1 = vmpackc.low %vm960_vm0, %vm958_vm14  ;;  %vm952_vm8 = vcmp.eq.s32.totalorder %v1799_v43, %v926_v63 }
 0x170   : > { %1405 = vmatprep.subr.msk.bf16.mxu0 %vm1404_vm7, %v1561_v52  ;;  %vm1410_vm5 = vmpackc.low %vm956_vm4, %vm954_vm11 }
 0x171   : > { %vm1412_vm15 = vmpackc.low %vm953_vm12, %vm951_vm9 }
 0x172   : > { %vm1414_vm7 = vmpackc.low %vm952_vm8, %vm950_vm3 }
 0x173   : > { %1407 = vmatpush1.bf16.msk.msra.mxu0 %vm1406_vm1, %v1561_v52 }
 0x174   : > { %1409 = vmatprep.subr.msk.bf16.mxu0 %vm1408_vm2, %v1561_v52 }
 0x177   : > { %1411 = vmatpush1.bf16.msk.msra.mxu0 %vm1410_vm5, %v1561_v52 }
 0x178   : > { %1413 = vmatprep.subr.msk.bf16.mxu0 %vm1412_vm15, %v1561_v52 }
 0x17b   : > { %1415 = vmatpush1.bf16.msk.msra.mxu0 %vm1414_vm7, %v1561_v52  ;;  %v1562_v52 = vmov 0.0  }
 0x17e   : > { %1416 = vmatmul.mubr.msk.bf16.vlgmr.msra.gmra.mxu0 %vm1007_vm13, %v2030_v61 }
 0x1d0   : > { %v2305_v47 = vpop.f32.mrf.mxu0 }
 0x1d1   : > { %vm1134_vm14 = vcmp.eq.f32.partialorder %v2305_v47, %v2305_v47 }
 0x1d2   : > { %v2307_v33 = vpop.f32.mrf.mxu0  ;;  %v1417_v61 = vsel %vm1134_vm14, 1.0, %v1562_v52 }
 0x1d3   : > { %vm1135_vm0 = vcmp.eq.f32.partialorder %v2307_v33, %v2307_v33 }
 0x1d4   : > { %v1049_v26 = vpop.f32.mrf.mxu0  ;;  %v1418_v11 = vsel %vm1135_vm0, 1.0, %v1562_v52 }
 0x1d6   : > { %v1050_v30 = vpop.f32.mrf.mxu0 }
 0x20b   : > { %v2309_v28 = vpop.f32.mrf.mxu1 }
 0x20c   : > { %vm1142_vm13 = vcmp.eq.f32.partialorder %v2309_v28, %v2305_v47  ;;  %vm1158_vm6 = vcmp.eq.f32.partialorder %v2305_v47, %v2309_v28  ;;  %vm1166_vm10 = vcmp.eq.f32.partialorder %v2309_v28, %v2309_v28  ;;  %vm1210_vm0 = vcmp.lt.f32.partialorder %v2309_v28, %v2305_v47 }
 0x20d   : > { %v2311_v51 = vpop.f32.mrf.mxu1  ;;  %v1419_v9 = vsel %vm1142_vm13, 1.0, %v1562_v52  ;;  %v1423_v8 = vsel %vm1158_vm6, 1.0, %v1562_v52  ;;  %v1425_v5 = vsel %vm1166_vm10, 1.0, %v1562_v52 }
 0x20e   : > { %vm1143_vm1 = vcmp.eq.f32.partialorder %v2311_v51, %v2307_v33  ;;  %vm1159_vm2 = vcmp.eq.f32.partialorder %v2307_v33, %v2311_v51  ;;  %vm1167_vm11 = vcmp.eq.f32.partialorder %v2311_v51, %v2311_v51  ;;  %v1148_v62 = vadd.f32 %v1419_v9, %v1417_v61 }
 0x20f   : > { %v1090_v20 = vpop.f32.mrf.mxu1  ;;  %v1420_v2 = vsel %vm1143_vm1, 1.0, %v1562_v52  ;;  %v1424_v4 = vsel %vm1159_vm2, 1.0, %v1562_v52  ;;  %v1426_v6 = vsel %vm1167_vm11, 1.0, %v1562_v52  ;;  %v1172_v10 = vadd.f32 %v1425_v5, %v1423_v8 }
 0x210   : > { %v1149_v38 = vadd.f32 %v1420_v2, %v1418_v11  ;;  %v1173_v14 = vadd.f32 %v1426_v6, %v1424_v4  ;;  %vm1211_vm11 = vcmp.lt.f32.partialorder %v2311_v51, %v2307_v33 }
 0x211   : > { %v1091_v43 = vpop.f32.mrf.mxu1 }
 0x23e   : > { %v2329_v7 = vpop.f32.mrf.mxu0 }
 0x23f   : > { %vm1150_vm4 = vcmp.eq.f32.partialorder %v2329_v7, %v2305_v47  ;;  %vm1174_vm9 = vcmp.eq.f32.partialorder %v2329_v7, %v2309_v28  ;;  %vm1182_vm12 = vcmp.eq.f32.partialorder %v2305_v47, %v2329_v7  ;;  %vm1190_vm5 = vcmp.eq.f32.partialorder %v2309_v28, %v2329_v7 }
 0x240   : > { %v1129_v18 = vpop.f32.mrf.mxu0  ;;  %v1421_v21 = vsel %vm1150_vm4, 1.0, %v1562_v52  ;;  %v1427_v25 = vsel %vm1174_vm9, 1.0, %v1562_v52  ;;  %v1429_v37 = vsel %vm1182_vm12, 1.0, %v1562_v52  ;;  %v1431_v32 = vsel %vm1190_vm5, 1.0, %v1562_v52 }
 0x241   : > { %vm1151_vm15 = vcmp.eq.f32.partialorder %v1129_v18, %v2307_v33  ;;  %vm1175_vm3 = vcmp.eq.f32.partialorder %v1129_v18, %v2311_v51  ;;  %vm1183_vm8 = vcmp.eq.f32.partialorder %v2307_v33, %v1129_v18  ;;  %vm1191_vm7 = vcmp.eq.f32.partialorder %v2311_v51, %v1129_v18 }
 0x242   : > { %v1131_v27 = vpop.f32.mrf.mxu0  ;;  %v1422_v36 = vsel %vm1151_vm15, 1.0, %v1562_v52  ;;  %v1156_v44 = vadd.f32 %v1421_v21, %v1148_v62  ;;  %v1428_v45 = vsel %vm1175_vm3, 1.0, %v1562_v52  ;;  %v1180_v3 = vadd.f32 %v1427_v25, %v1172_v10 }
 0x243   : > { %v1157_v22 = vadd.f32 %v1422_v36, %v1149_v38  ;;  %v1181_v24 = vadd.f32 %v1428_v45, %v1173_v14  ;;  %v1430_v17 = vsel %vm1183_vm8, 1.0, %v1562_v52  ;;  %v1432_v29 = vsel %vm1191_vm7, 1.0, %v1562_v52 }
 0x244   : > { %v1132_v53 = vpop.f32.mrf.mxu0  ;;  %v1196_v54 = vadd.f32 %v1431_v32, %v1429_v37  ;;  %v1197_v31 = vadd.f32 %v1432_v29, %v1430_v17  ;;  %vm1198_vm14 = vcmp.eq.f32.partialorder %v2329_v7, %v2329_v7  ;;  %vm1199_vm13 = vcmp.eq.f32.partialorder %v1129_v18, %v1129_v18 }
 0x245   : > { %vm1206_vm6 = vcmp.gt.f32.partialorder %v1180_v3, %v1156_v44  ;;  %vm1208_vm10 = vcmp.eq.f32.partialorder %v1180_v3, %v1156_v44  ;;  %vm1209_vm1 = vcmp.eq.f32.partialorder %v1181_v24, %v1157_v22  ;;  %vm1207_vm2 = vcmp.gt.f32.partialorder %v1181_v24, %v1157_v22 }
 0x246   : > { %vm1212_vm4 = vmand %vm1208_vm10, %vm1210_vm0  ;;  %v1433_v23 = vsel %vm1198_vm14, 1.0, %v1562_v52  ;;  %v1434_v42 = vsel %vm1199_vm13, 1.0, %v1562_v52 }
 0x247   : > { %vm1213_vm9 = vmand %vm1209_vm1, %vm1211_vm11  ;;  %v1204_v49 = vadd.f32 %v1433_v23, %v1196_v54  ;;  %v1205_v50 = vadd.f32 %v1434_v42, %v1197_v31 }
 0x248   : > { %vm1214_vm12 = vmor %vm1206_vm6, %vm1212_vm4 }
 0x249   : > { %vm1215_vm5 = vmor %vm1207_vm2, %vm1213_vm9  ;;  %v1216_v39 = vsel %vm1214_vm12, %v2309_v28, %v2305_v47  ;;  %v1218_v59 = vsel %vm1214_vm12, %v1180_v3, %v1156_v44 }
 0x24a   : > { %v1217_v12 = vsel %vm1215_vm5, %v2311_v51, %v2307_v33  ;;  %v1219_v40 = vsel %vm1215_vm5, %v1181_v24, %v1157_v22  ;;  %vm1222_vm15 = vcmp.eq.f32.partialorder %v1204_v49, %v1218_v59  ;;  %vm1220_vm3 = vcmp.gt.f32.partialorder %v1204_v49, %v1218_v59 }
 0x24b   : > { %vm1223_vm8 = vcmp.eq.f32.partialorder %v1205_v50, %v1219_v40  ;;  %vm1224_vm7 = vcmp.lt.f32.partialorder %v2329_v7, %v1216_v39  ;;  %vm1225_vm14 = vcmp.lt.f32.partialorder %v1129_v18, %v1217_v12  ;;  %vm1221_vm0 = vcmp.gt.f32.partialorder %v1205_v50, %v1219_v40 }
 0x24c   : > { %vm1226_vm13 = vmand %vm1222_vm15, %vm1224_vm7 }
 0x24d   : > { %vm1227_vm6 = vmand %vm1223_vm8, %vm1225_vm14 }
 0x24e   : > { %vm1228_vm10 = vmor %vm1220_vm3, %vm1226_vm13 }
 0x24f   : > { %vm1229_vm1 = vmor %vm1221_vm0, %vm1227_vm6  ;;  %v1230_v41 = vsel %vm1228_vm10, %v2329_v7, %v1216_v39 }
 0x250   : > { %v1231_v15 = vsel %vm1229_vm1, %v1129_v18, %v1217_v12 }
 0x251   : > { %v1234_v48 = vcombine.low %v1230_v41, %v1231_v15 }
 0x253   : > { %1236 = vst [vmem:[%s164_s5] sm:$0xff] %v1234_v48 }
 0x254   : > { %1509 = shalt.err (!%p1506_p3)
}
 0x255   : > { %s1510_s20 = scalar_lea.hbm %s1250_s9, 128  ;;  %s1514_s26 = scalar_lea.hbm %s2396_s3, 256 }
 0x256   : > { %p1511_p4 = scmp.ne.s32.totalorder %s1250_s9, %s1510_s20  ;;  %p1515_p9 = scmp.lt.s32.totalorder %s1250_s9, %s2396_s3 }
 0x257   : > { %p1516_p10 = scmp.lt.s32.totalorder %s1514_s26, %s1510_s20 }
 0x258   : > { %p1512_p7 = pnand %p1511_p4, %p1622_p5 }
 0x259   : > { %p1517_p11 = por %p1516_p10, %p1515_p9 }
 0x25a   : > { %p1513_p8 = pneg %p1512_p7 }
 0x25c   : > { %p1518_p12 = pnand %p1517_p11, %p1513_p8 }
 0x25e   : > { %1521 = shalt.err (!%p1518_p12)
}
 0x25f   : > { %1441 = dma.vmem_to_hbm [thread:$0]  (%p1622_p5), %s1253_s6, 128, %s1250_s9, %s1238_s10  }
 0x260 PF: > { %p1447_p13 = scmp.ge.s32.totalorder %s1556_s15, 2  ;;  %s1264_s29 = sand.u32 1, %s1544_s12  }
 0x261   : > { %s1265_s30 = scalar_lea.sflag [#allocation3], %s1264_s29 }
 0x262   : > { %p1444_p0 = pnand %p1447_p13, %p1626_p6 }
 0x264   : > { %p1445_p1 = pneg %p1444_p0 }
 0x266   : > { %1539 = dma.done.wait (%p1445_p1), %s1265_s30, 128  }
 0x267   : > { %1541 = vsyncadd (%p1445_p1), %s1265_s30, 4294967168  ;;  %p13_p2 = scmp.ge.s32.totalorder %s1609_s18, 4   ;;  %s2403_s12 = smov %s1548_s13 }
 0x268   : > { %s2404_s13 = smov %s1552_s14  ;;  %s2405_s14 = smov %s1620_s21 }
 0x269   : > { %s2406_s15 = smov %s1609_s18  ;;  %15 = sbr.rel (!%p13_p2) target bundleno = 3 (0x3), region = 67 }
 0x26e   :  { %1270 = vsyncpa [#allocation3], 1 }
 0x26f   :  { %1272 = vsyncpa [#allocation3 + $0x1], 1 }

</bundles_post_ra>
